<compile_context>
chip_gen: v7x
topology: tpu7x:2x2x1
jax: 0.10.0
libtpu: 0.0.40
codegen_flags: <defaults>
</compile_context>

<pallas_src>
import jax
import jax.numpy as jnp
from jax.experimental import pallas as pl
from jax.experimental.pallas import tpu as pltpu


# ----------------------------------------------------------------------------
# Fused Pallas kernel: one grid step == one batch element, whole block in VMEM.
# ----------------------------------------------------------------------------
def _fused_res_down_kernel(
    xee_ref, xeo_ref, xoe_ref, xoo_ref,          # x parity planes (1, Ho, Wo, Cin) f32
    wd_ref, bd_ref, w1_ref, b1_ref, w2_ref, b2_ref, wi_ref, bi_ref,
    o_ref,                                        # (1, Ho, Wo, Cout)
    pee, peo, poe, poo,                           # (Ho+1, Wo+1, Cin)  f32 halo scratch
    pmid,                                         # (Ho+2, Wo+2, Cout) f32 halo scratch
):
    _, Ho, Wo, Cin = xee_ref.shape
    Cout = wd_ref.shape[-1]
    f32, bf16 = jnp.float32, jnp.bfloat16

    def swish(v):
        return v * jax.nn.sigmoid(v)              # f32 VPU/EUP math

    # Zero the halo scratches every step: the batch grid axis is 'parallel' (megacore may
    # split it across cores), so a program_id==0 one-shot init is not safe. Buffers are tiny.
    pee[...] = jnp.zeros(pee.shape, pee.dtype)
    peo[...] = jnp.zeros(peo.shape, peo.dtype)
    poe[...] = jnp.zeros(poe.shape, poe.dtype)
    poo[...] = jnp.zeros(poo.shape, poo.dtype)
    pmid[...] = jnp.zeros(pmid.shape, pmid.dtype)

    # ---- conv_down(swish(x)): 3x3, stride 2, pad 1 — computed directly at half resolution.
    # x is decomposed as ee=x[0::2,0::2], eo=x[0::2,1::2], oe=x[1::2,0::2], oo=x[1::2,1::2];
    # each plane gets one leading zero row/col so every tap (kh, kw) is a unit-stride window.
    # (swish(0) == 0, so swish-then-zero-pad matches the reference pad-then-conv.)
    pee[1:, 1:, :] = swish(xee_ref[0])
    peo[1:, 1:, :] = swish(xeo_ref[0])
    poe[1:, 1:, :] = swish(xoe_ref[0])
    poo[1:, 1:, :] = swish(xoo_ref[0])

    planes = {(0, 0): pee, (0, 1): peo, (1, 0): poe, (1, 1): poo}  # (row_parity, col_parity)

    acc = jnp.zeros((Ho * Wo, Cout), f32)
    for kh in range(3):                            # 9 taps, unrolled -> 9 MXU matmuls
        for kw in range(3):
            rp = 0 if kh == 1 else 1               # tap row parity: 1 -> odd rows of x
            cp = 0 if kw == 1 else 1
            r0 = 0 if kh == 0 else 1               # kh==0 / kw==0 read the zero halo row/col
            c0 = 0 if kw == 0 else 1
            patch = planes[(rp, cp)][r0:r0 + Ho, c0:c0 + Wo, :]
            acc += jnp.dot(patch.reshape(Ho * Wo, Cin).astype(bf16),
                           wd_ref[kh, kw],
                           preferred_element_type=f32)
    xd = acc + bd_ref[...]                         # (Ho*Wo, Cout), f32

    # ---- stride-1 3x3 'same' conv of swish(act) through the shared halo scratch (reused).
    def conv3x3_same(act_flat, w_ref_, b_ref_):
        pmid[1:Ho + 1, 1:Wo + 1, :] = swish(act_flat).reshape(Ho, Wo, Cout)
        a = jnp.zeros((Ho * Wo, Cout), f32)
        for kh in range(3):
            for kw in range(3):
                patch = pmid[kh:kh + Ho, kw:kw + Wo, :]
                a += jnp.dot(patch.reshape(Ho * Wo, Cout).astype(bf16),
                             w_ref_[kh, kw],
                             preferred_element_type=f32)
        return a + b_ref_[...]

    x1 = conv3x3_same(xd, w1_ref, b1_ref)          # conv1(swish(conv_down(...)))
    # dropout is the identity at inference.
    # TODO(synk): training-mode dropout (random mask via pltpu.prng_*) not implemented.
    x3 = conv3x3_same(x1, w2_ref, b2_ref)          # conv2(dropout(swish(x1)))

    # ---- identity branch: 1x1 stride-2 conv of the *raw* x == channel matmul on x_ee.
    xs = xee_ref[0].reshape(Ho * Wo, Cin).astype(bf16)
    idt = jnp.dot(xs, wi_ref[...], preferred_element_type=f32) + bi_ref[...]

    o_ref[...] = (x3 + idt).reshape(1, Ho, Wo, Cout).astype(o_ref.dtype)


# ----------------------------------------------------------------------------
# Wrapper: parity-plane prep + one fused pallas_call (grid over batch).
# ----------------------------------------------------------------------------
def res_down_noemb(x, params):
    """x: (B, H, W, dim) NHWC float32 -> (B, H//2, W//2, out_dim)."""
    B, H, W, Cin = x.shape
    Cout = params["wd"].shape[-1]
    assert H % 2 == 0 and W % 2 == 0, "H and W must be even"
    assert Cin == Cout, "res_downNoEmb identity branch requires dim == out_dim"
    Ho, Wo = H // 2, W // 2

    # Parity planes of x: a single 1x pass over x (replaces the old jnp.pad glue and the
    # post-conv [::2, ::2] slice) and directly provides the identity-branch input (x_ee).
    x_ee = x[:, 0::2, 0::2, :]
    x_eo = x[:, 0::2, 1::2, :]
    x_oe = x[:, 1::2, 0::2, :]
    x_oo = x[:, 1::2, 1::2, :]

    bf16 = jnp.bfloat16
    wd = params["wd"].astype(bf16)
    w1 = params["w1"].astype(bf16)
    w2 = params["w2"].astype(bf16)
    wi = params["wi"].astype(bf16)
    bd = params["bd"].reshape(1, Cout).astype(jnp.float32)
    b1 = params["b1"].reshape(1, Cout).astype(jnp.float32)
    b2 = params["b2"].reshape(1, Cout).astype(jnp.float32)
    bi = params["bi"].reshape(1, Cout).astype(jnp.float32)

    plane_spec = pl.BlockSpec((1, Ho, Wo, Cin), lambda b: (b, 0, 0, 0))
    bias_spec = pl.BlockSpec((1, Cout), lambda b: (0, 0))

    def w3_spec(c_in):
        return pl.BlockSpec((3, 3, c_in, Cout), lambda b: (0, 0, 0, 0))

    return pl.pallas_call(
        _fused_res_down_kernel,
        out_shape=jax.ShapeDtypeStruct((B, Ho, Wo, Cout), x.dtype),
        grid=(B,),
        in_specs=[
            plane_spec, plane_spec, plane_spec, plane_spec,
            w3_spec(Cin), bias_spec,        # conv_down
            w3_spec(Cout), bias_spec,       # conv1
            w3_spec(Cout), bias_spec,       # conv2
            pl.BlockSpec((Cout, Cout), lambda b: (0, 0)), bias_spec,   # identity 1x1
        ],
        out_specs=pl.BlockSpec((1, Ho, Wo, Cout), lambda b: (b, 0, 0, 0)),
        scratch_shapes=[
            pltpu.VMEM((Ho + 1, Wo + 1, Cin), jnp.float32),   # padded ee plane
            pltpu.VMEM((Ho + 1, Wo + 1, Cin), jnp.float32),   # padded eo plane
            pltpu.VMEM((Ho + 1, Wo + 1, Cin), jnp.float32),   # padded oe plane
            pltpu.VMEM((Ho + 1, Wo + 1, Cin), jnp.float32),   # padded oo plane
            pltpu.VMEM((Ho + 2, Wo + 2, Cout), jnp.float32),  # shared conv1/conv2 halo
        ],
        compiler_params=pltpu.CompilerParams(dimension_semantics=("parallel",)),
    )(x_ee, x_eo, x_oe, x_oo, wd, bd, w1, b1, w2, b2, wi, bi)


# ----------------------------------------------------------------------------
# Deterministic synthetic parameters + pure-JAX reference (mirrors the kernel's
# bf16-operand / f32-accumulate matmuls so the comparison is apples-to-apples).
# ----------------------------------------------------------------------------
def init_params(key, dim, out_dim):
    ks = jax.random.split(key, 8)

    def u(k, shape, fan_in):
        bound = 1.0 / jnp.sqrt(fan_in)
        return jax.random.uniform(k, shape, jnp.float32, -bound, bound)

    return {
        "wd": u(ks[0], (3, 3, dim, out_dim), 3 * 3 * dim),
        "bd": u(ks[1], (out_dim,), 3 * 3 * dim),
        "w1": u(ks[2], (3, 3, out_dim, out_dim), 3 * 3 * out_dim),
        "b1": u(ks[3], (out_dim,), 3 * 3 * out_dim),
        "w2": u(ks[4], (3, 3, out_dim, out_dim), 3 * 3 * out_dim),
        "b2": u(ks[5], (out_dim,), 3 * 3 * out_dim),
        "wi": u(ks[6], (out_dim, out_dim), out_dim),   # 1x1 conv as a matrix
        "bi": u(ks[7], (out_dim,), out_dim),
    }


def _swish_f32(t):
    t = t.astype(jnp.float32)
    return t * jax.nn.sigmoid(t)


def ref_forward(x, params):
    bf16 = jnp.bfloat16

    def conv(inp, w, b, stride, pad):
        y = jax.lax.conv_general_dilated(
            inp.astype(bf16), w.astype(bf16),
            window_strides=(stride, stride),
            padding=((pad, pad), (pad, pad)),
            dimension_numbers=("NHWC", "HWIO", "NHWC"),
            preferred_element_type=jnp.float32)
        return y + b

    xd = conv(_swish_f32(x), params["wd"], params["bd"], 2, 1)
    x1 = conv(_swish_f32(xd), params["w1"], params["b1"], 1, 1)
    x3 = conv(_swish_f32(x1), params["w2"], params["b2"], 1, 1)
    wi = params["wi"].reshape(1, 1, *params["wi"].shape)
    idt = conv(x, wi, params["bi"], 2, 0)
    return x3 + idt


if __name__ == "__main__":
    key = jax.random.PRNGKey(0)
    kx, kp = jax.random.split(key)

    B, H, W = 2, 16, 16
    dim = out_dim = 8          # identity branch requires dim == out_dim
    # dropout p is a no-op at inference.

    x = jax.random.normal(kx, (B, H, W, dim), jnp.float32)   # NHWC (PyTorch NCHW: [B, dim, H, W])
    params = init_params(kp, dim, out_dim)

    fwd = jax.jit(res_down_noemb)
    out = jax.block_until_ready(fwd(x, params))
    ref = ref_forward(x, params)

    assert out.shape == (B, H // 2, W // 2, out_dim), out.shape
    max_err = float(jnp.max(jnp.abs(out - ref)))
    assert jnp.allclose(out, ref, rtol=1e-2, atol=1e-2), f"max_err={max_err}"
    print("KERNEL_OK")
</pallas_src>

<mosaic_0001>
module attributes {stable_mosaic.version = 11 : i64} {
  func.func @_fused_res_down_kernel(%arg0: i32, %arg1: memref<1x8x8x8xf32, #tpu.memory_space<vmem>>, %arg2: memref<1x8x8x8xf32, #tpu.memory_space<vmem>>, %arg3: memref<1x8x8x8xf32, #tpu.memory_space<vmem>>, %arg4: memref<1x8x8x8xf32, #tpu.memory_space<vmem>>, %arg5: memref<3x3x8x8xbf16, #tpu.memory_space<vmem>>, %arg6: memref<1x8xf32, #tpu.memory_space<vmem>>, %arg7: memref<3x3x8x8xbf16, #tpu.memory_space<vmem>>, %arg8: memref<1x8xf32, #tpu.memory_space<vmem>>, %arg9: memref<3x3x8x8xbf16, #tpu.memory_space<vmem>>, %arg10: memref<1x8xf32, #tpu.memory_space<vmem>>, %arg11: memref<8x8xbf16, #tpu.memory_space<vmem>>, %arg12: memref<1x8xf32, #tpu.memory_space<vmem>>, %arg13: memref<1x8x8x8xf32, #tpu.memory_space<vmem>>, %arg14: memref<9x9x8xf32, #tpu.memory_space<vmem>>, %arg15: memref<9x9x8xf32, #tpu.memory_space<vmem>>, %arg16: memref<9x9x8xf32, #tpu.memory_space<vmem>>, %arg17: memref<9x9x8xf32, #tpu.memory_space<vmem>>, %arg18: memref<10x10x8xf32, #tpu.memory_space<vmem>>) attributes {dimension_semantics = [#tpu.dimension_semantics<parallel>], iteration_bounds = array<i64: 2>, scalar_prefetch = 0 : i64, scratch_operands = 5 : i64, tpu.core_type = #tpu.core_type<tc>, window_params = [{transform_indices = @transform_0, window_bounds = array<i64: 1, 8, 8, 8>}, {transform_indices = @transform_1, window_bounds = array<i64: 1, 8, 8, 8>}, {transform_indices = @transform_2, window_bounds = array<i64: 1, 8, 8, 8>}, {transform_indices = @transform_3, window_bounds = array<i64: 1, 8, 8, 8>}, {pipeline_mode = #tpu.pipeline_mode<synchronous>, transform_indices = @transform_4, window_bounds = array<i64: 3, 3, 8, 8>}, {pipeline_mode = #tpu.pipeline_mode<synchronous>, transform_indices = @transform_5, window_bounds = array<i64: 1, 8>}, {pipeline_mode = #tpu.pipeline_mode<synchronous>, transform_indices = @transform_6, window_bounds = array<i64: 3, 3, 8, 8>}, {pipeline_mode = #tpu.pipeline_mode<synchronous>, transform_indices = @transform_7, window_bounds = array<i64: 1, 8>}, {pipeline_mode = #tpu.pipeline_mode<synchronous>, transform_indices = @transform_8, window_bounds = array<i64: 3, 3, 8, 8>}, {pipeline_mode = #tpu.pipeline_mode<synchronous>, transform_indices = @transform_9, window_bounds = array<i64: 1, 8>}, {pipeline_mode = #tpu.pipeline_mode<synchronous>, transform_indices = @transform_10, window_bounds = array<i64: 8, 8>}, {pipeline_mode = #tpu.pipeline_mode<synchronous>, transform_indices = @transform_11, window_bounds = array<i64: 1, 8>}, {transform_indices = @transform_12, window_bounds = array<i64: 1, 8, 8, 8>}]} {
    %cst = arith.constant 0.000000e+00 : f32
    %0 = vector.broadcast %cst : f32 to vector<9x9x8xf32>
    %c0 = arith.constant 0 : index
    %c0_0 = arith.constant 0 : index
    %c0_1 = arith.constant 0 : index
    %1 = vector.load %arg14[%c0, %c0_0, %c0_1] : memref<9x9x8xf32, #tpu.memory_space<vmem>>, vector<9x9x8xf32>
    tpu.vector_store %arg14[%c0, %c0_0, %c0_1], %0 {strides = array<i32>} : memref<9x9x8xf32, #tpu.memory_space<vmem>>, vector<9x9x8xf32>,
    %cst_2 = arith.constant 0.000000e+00 : f32
    %2 = vector.broadcast %cst_2 : f32 to vector<9x9x8xf32>
    %c0_3 = arith.constant 0 : index
    %c0_4 = arith.constant 0 : index
    %c0_5 = arith.constant 0 : index
    %3 = vector.load %arg15[%c0_3, %c0_4, %c0_5] : memref<9x9x8xf32, #tpu.memory_space<vmem>>, vector<9x9x8xf32>
    tpu.vector_store %arg15[%c0_3, %c0_4, %c0_5], %2 {strides = array<i32>} : memref<9x9x8xf32, #tpu.memory_space<vmem>>, vector<9x9x8xf32>,
    %cst_6 = arith.constant 0.000000e+00 : f32
    %4 = vector.broadcast %cst_6 : f32 to vector<9x9x8xf32>
    %c0_7 = arith.constant 0 : index
    %c0_8 = arith.constant 0 : index
    %c0_9 = arith.constant 0 : index
    %5 = vector.load %arg16[%c0_7, %c0_8, %c0_9] : memref<9x9x8xf32, #tpu.memory_space<vmem>>, vector<9x9x8xf32>
    tpu.vector_store %arg16[%c0_7, %c0_8, %c0_9], %4 {strides = array<i32>} : memref<9x9x8xf32, #tpu.memory_space<vmem>>, vector<9x9x8xf32>,
    %cst_10 = arith.constant 0.000000e+00 : f32
    %6 = vector.broadcast %cst_10 : f32 to vector<9x9x8xf32>
    %c0_11 = arith.constant 0 : index
    %c0_12 = arith.constant 0 : index
    %c0_13 = arith.constant 0 : index
    %7 = vector.load %arg17[%c0_11, %c0_12, %c0_13] : memref<9x9x8xf32, #tpu.memory_space<vmem>>, vector<9x9x8xf32>
    tpu.vector_store %arg17[%c0_11, %c0_12, %c0_13], %6 {strides = array<i32>} : memref<9x9x8xf32, #tpu.memory_space<vmem>>, vector<9x9x8xf32>,
    %cst_14 = arith.constant 0.000000e+00 : f32
    %8 = vector.broadcast %cst_14 : f32 to vector<10x10x8xf32>
    %c0_15 = arith.constant 0 : index
    %c0_16 = arith.constant 0 : index
    %c0_17 = arith.constant 0 : index
    %9 = vector.load %arg18[%c0_15, %c0_16, %c0_17] : memref<10x10x8xf32, #tpu.memory_space<vmem>>, vector<10x10x8xf32>
    tpu.vector_store %arg18[%c0_15, %c0_16, %c0_17], %8 {strides = array<i32>} : memref<10x10x8xf32, #tpu.memory_space<vmem>>, vector<10x10x8xf32>,
    %c0_18 = arith.constant 0 : index
    %c0_19 = arith.constant 0 : index
    %c0_20 = arith.constant 0 : index
    %c0_21 = arith.constant 0 : index
    %10 = vector.load %arg1[%c0_18, %c0_19, %c0_20, %c0_21] : memref<1x8x8x8xf32, #tpu.memory_space<vmem>>, vector<1x8x8x8xf32>
    %11 = vector.shape_cast %10 : vector<1x8x8x8xf32> to vector<8x8x8xf32>
    %12 = arith.negf %11 : vector<8x8x8xf32>
    %13 = math.exp %12 : vector<8x8x8xf32>
    %cst_22 = arith.constant 1.000000e+00 : f32
    %14 = vector.broadcast %cst_22 : f32 to vector<8x8x8xf32>
    %15 = arith.addf %14, %13 : vector<8x8x8xf32>
    %16 = arith.divf %14, %15 : vector<8x8x8xf32>
    %17 = arith.mulf %11, %16 : vector<8x8x8xf32>
    %c1 = arith.constant 1 : index
    %c1_23 = arith.constant 1 : index
    %c0_24 = arith.constant 0 : index
    %18 = vector.load %arg14[%c1, %c1_23, %c0_24] : memref<9x9x8xf32, #tpu.memory_space<vmem>>, vector<8x8x8xf32>
    tpu.vector_store %arg14[%c1, %c1_23, %c0_24], %17 {strides = array<i32>} : memref<9x9x8xf32, #tpu.memory_space<vmem>>, vector<8x8x8xf32>,
    %c0_25 = arith.constant 0 : index
    %c0_26 = arith.constant 0 : index
    %c0_27 = arith.constant 0 : index
    %c0_28 = arith.constant 0 : index
    %19 = vector.load %arg2[%c0_25, %c0_26, %c0_27, %c0_28] : memref<1x8x8x8xf32, #tpu.memory_space<vmem>>, vector<1x8x8x8xf32>
    %20 = vector.shape_cast %19 : vector<1x8x8x8xf32> to vector<8x8x8xf32>
    %21 = arith.negf %20 : vector<8x8x8xf32>
    %22 = math.exp %21 : vector<8x8x8xf32>
    %cst_29 = arith.constant 1.000000e+00 : f32
    %23 = vector.broadcast %cst_29 : f32 to vector<8x8x8xf32>
    %24 = arith.addf %23, %22 : vector<8x8x8xf32>
    %25 = arith.divf %23, %24 : vector<8x8x8xf32>
    %26 = arith.mulf %20, %25 : vector<8x8x8xf32>
    %c1_30 = arith.constant 1 : index
    %c1_31 = arith.constant 1 : index
    %c0_32 = arith.constant 0 : index
    %27 = vector.load %arg15[%c1_30, %c1_31, %c0_32] : memref<9x9x8xf32, #tpu.memory_space<vmem>>, vector<8x8x8xf32>
    tpu.vector_store %arg15[%c1_30, %c1_31, %c0_32], %26 {strides = array<i32>} : memref<9x9x8xf32, #tpu.memory_space<vmem>>, vector<8x8x8xf32>,
    %c0_33 = arith.constant 0 : index
    %c0_34 = arith.constant 0 : index
    %c0_35 = arith.constant 0 : index
    %c0_36 = arith.constant 0 : index
    %28 = vector.load %arg3[%c0_33, %c0_34, %c0_35, %c0_36] : memref<1x8x8x8xf32, #tpu.memory_space<vmem>>, vector<1x8x8x8xf32>
    %29 = vector.shape_cast %28 : vector<1x8x8x8xf32> to vector<8x8x8xf32>
    %30 = arith.negf %29 : vector<8x8x8xf32>
    %31 = math.exp %30 : vector<8x8x8xf32>
    %cst_37 = arith.constant 1.000000e+00 : f32
    %32 = vector.broadcast %cst_37 : f32 to vector<8x8x8xf32>
    %33 = arith.addf %32, %31 : vector<8x8x8xf32>
    %34 = arith.divf %32, %33 : vector<8x8x8xf32>
    %35 = arith.mulf %29, %34 : vector<8x8x8xf32>
    %c1_38 = arith.constant 1 : index
    %c1_39 = arith.constant 1 : index
    %c0_40 = arith.constant 0 : index
    %36 = vector.load %arg16[%c1_38, %c1_39, %c0_40] : memref<9x9x8xf32, #tpu.memory_space<vmem>>, vector<8x8x8xf32>
    tpu.vector_store %arg16[%c1_38, %c1_39, %c0_40], %35 {strides = array<i32>} : memref<9x9x8xf32, #tpu.memory_space<vmem>>, vector<8x8x8xf32>,
    %c0_41 = arith.constant 0 : index
    %c0_42 = arith.constant 0 : index
    %c0_43 = arith.constant 0 : index
    %c0_44 = arith.constant 0 : index
    %37 = vector.load %arg4[%c0_41, %c0_42, %c0_43, %c0_44] : memref<1x8x8x8xf32, #tpu.memory_space<vmem>>, vector<1x8x8x8xf32>
    %38 = vector.shape_cast %37 : vector<1x8x8x8xf32> to vector<8x8x8xf32>
    %39 = arith.negf %38 : vector<8x8x8xf32>
    %40 = math.exp %39 : vector<8x8x8xf32>
    %cst_45 = arith.constant 1.000000e+00 : f32
    %41 = vector.broadcast %cst_45 : f32 to vector<8x8x8xf32>
    %42 = arith.addf %41, %40 : vector<8x8x8xf32>
    %43 = arith.divf %41, %42 : vector<8x8x8xf32>
    %44 = arith.mulf %38, %43 : vector<8x8x8xf32>
    %c1_46 = arith.constant 1 : index
    %c1_47 = arith.constant 1 : index
    %c0_48 = arith.constant 0 : index
    %45 = vector.load %arg17[%c1_46, %c1_47, %c0_48] : memref<9x9x8xf32, #tpu.memory_space<vmem>>, vector<8x8x8xf32>
    tpu.vector_store %arg17[%c1_46, %c1_47, %c0_48], %44 {strides = array<i32>} : memref<9x9x8xf32, #tpu.memory_space<vmem>>, vector<8x8x8xf32>,
    %cst_49 = arith.constant 0.000000e+00 : f32
    %46 = vector.broadcast %cst_49 : f32 to vector<64x8xf32>
    %c0_50 = arith.constant 0 : index
    %c0_51 = arith.constant 0 : index
    %c0_52 = arith.constant 0 : index
    %47 = vector.load %arg17[%c0_50, %c0_51, %c0_52] : memref<9x9x8xf32, #tpu.memory_space<vmem>>, vector<8x8x8xf32>
    %48 = vector.shape_cast %47 : vector<8x8x8xf32> to vector<64x8xf32>
    %49 = arith.truncf %48 : vector<64x8xf32> to vector<64x8xbf16>
    %c0_53 = arith.constant 0 : index
    %c0_54 = arith.constant 0 : index
    %c0_55 = arith.constant 0 : index
    %c0_56 = arith.constant 0 : index
    %50 = vector.load %arg5[%c0_53, %c0_54, %c0_55, %c0_56] : memref<3x3x8x8xbf16, #tpu.memory_space<vmem>>, vector<1x1x8x8xbf16>
    %51 = vector.shape_cast %50 : vector<1x1x8x8xbf16> to vector<8x8xbf16>
    %cst_57 = arith.constant dense<0.000000e+00> : vector<64x8xf32>
    %52 = tpu.matmul %49, %51, %cst_57 {dimension_numbers = #tpu.dot_dimension_numbers<[1], [0], [0], [1], [0, 0, 1, 1], [], []>} : vector<64x8xbf16>, vector<8x8xbf16>, vector<64x8xf32> -> vector<64x8xf32>
    %53 = arith.addf %46, %52 : vector<64x8xf32>
    %c0_58 = arith.constant 0 : index
    %c1_59 = arith.constant 1 : index
    %c0_60 = arith.constant 0 : index
    %54 = vector.load %arg16[%c0_58, %c1_59, %c0_60] : memref<9x9x8xf32, #tpu.memory_space<vmem>>, vector<8x8x8xf32>
    %55 = vector.shape_cast %54 : vector<8x8x8xf32> to vector<64x8xf32>
    %56 = arith.truncf %55 : vector<64x8xf32> to vector<64x8xbf16>
    %c0_61 = arith.constant 0 : index
    %c1_62 = arith.constant 1 : index
    %c0_63 = arith.constant 0 : index
    %c0_64 = arith.constant 0 : index
    %57 = vector.load %arg5[%c0_61, %c1_62, %c0_63, %c0_64] : memref<3x3x8x8xbf16, #tpu.memory_space<vmem>>, vector<1x1x8x8xbf16>
    %58 = vector.shape_cast %57 : vector<1x1x8x8xbf16> to vector<8x8xbf16>
    %cst_65 = arith.constant dense<0.000000e+00> : vector<64x8xf32>
    %59 = tpu.matmul %56, %58, %cst_65 {dimension_numbers = #tpu.dot_dimension_numbers<[1], [0], [0], [1], [0, 0, 1, 1], [], []>} : vector<64x8xbf16>, vector<8x8xbf16>, vector<64x8xf32> -> vector<64x8xf32>
    %60 = arith.addf %53, %59 : vector<64x8xf32>
    %c0_66 = arith.constant 0 : index
    %c1_67 = arith.constant 1 : index
    %c0_68 = arith.constant 0 : index
    %61 = vector.load %arg17[%c0_66, %c1_67, %c0_68] : memref<9x9x8xf32, #tpu.memory_space<vmem>>, vector<8x8x8xf32>
    %62 = vector.shape_cast %61 : vector<8x8x8xf32> to vector<64x8xf32>
    %63 = arith.truncf %62 : vector<64x8xf32> to vector<64x8xbf16>
    %c0_69 = arith.constant 0 : index
    %c2 = arith.constant 2 : index
    %c0_70 = arith.constant 0 : index
    %c0_71 = arith.constant 0 : index
    %64 = vector.load %arg5[%c0_69, %c2, %c0_70, %c0_71] : memref<3x3x8x8xbf16, #tpu.memory_space<vmem>>, vector<1x1x8x8xbf16>
    %65 = vector.shape_cast %64 : vector<1x1x8x8xbf16> to vector<8x8xbf16>
    %cst_72 = arith.constant dense<0.000000e+00> : vector<64x8xf32>
    %66 = tpu.matmul %63, %65, %cst_72 {dimension_numbers = #tpu.dot_dimension_numbers<[1], [0], [0], [1], [0, 0, 1, 1], [], []>} : vector<64x8xbf16>, vector<8x8xbf16>, vector<64x8xf32> -> vector<64x8xf32>
    %67 = arith.addf %60, %66 : vector<64x8xf32>
    %c1_73 = arith.constant 1 : index
    %c0_74 = arith.constant 0 : index
    %c0_75 = arith.constant 0 : index
    %68 = vector.load %arg15[%c1_73, %c0_74, %c0_75] : memref<9x9x8xf32, #tpu.memory_space<vmem>>, vector<8x8x8xf32>
    %69 = vector.shape_cast %68 : vector<8x8x8xf32> to vector<64x8xf32>
    %70 = arith.truncf %69 : vector<64x8xf32> to vector<64x8xbf16>
    %c1_76 = arith.constant 1 : index
    %c0_77 = arith.constant 0 : index
    %c0_78 = arith.constant 0 : index
    %c0_79 = arith.constant 0 : index
    %71 = vector.load %arg5[%c1_76, %c0_77, %c0_78, %c0_79] : memref<3x3x8x8xbf16, #tpu.memory_space<vmem>>, vector<1x1x8x8xbf16>
    %72 = vector.shape_cast %71 : vector<1x1x8x8xbf16> to vector<8x8xbf16>
    %cst_80 = arith.constant dense<0.000000e+00> : vector<64x8xf32>
    %73 = tpu.matmul %70, %72, %cst_80 {dimension_numbers = #tpu.dot_dimension_numbers<[1], [0], [0], [1], [0, 0, 1, 1], [], []>} : vector<64x8xbf16>, vector<8x8xbf16>, vector<64x8xf32> -> vector<64x8xf32>
    %74 = arith.addf %67, %73 : vector<64x8xf32>
    %c1_81 = arith.constant 1 : index
    %c1_82 = arith.constant 1 : index
    %c0_83 = arith.constant 0 : index
    %75 = vector.load %arg14[%c1_81, %c1_82, %c0_83] : memref<9x9x8xf32, #tpu.memory_space<vmem>>, vector<8x8x8xf32>
    %76 = vector.shape_cast %75 : vector<8x8x8xf32> to vector<64x8xf32>
    %77 = arith.truncf %76 : vector<64x8xf32> to vector<64x8xbf16>
    %c1_84 = arith.constant 1 : index
    %c1_85 = arith.constant 1 : index
    %c0_86 = arith.constant 0 : index
    %c0_87 = arith.constant 0 : index
    %78 = vector.load %arg5[%c1_84, %c1_85, %c0_86, %c0_87] : memref<3x3x8x8xbf16, #tpu.memory_space<vmem>>, vector<1x1x8x8xbf16>
    %79 = vector.shape_cast %78 : vector<1x1x8x8xbf16> to vector<8x8xbf16>
    %cst_88 = arith.constant dense<0.000000e+00> : vector<64x8xf32>
    %80 = tpu.matmul %77, %79, %cst_88 {dimension_numbers = #tpu.dot_dimension_numbers<[1], [0], [0], [1], [0, 0, 1, 1], [], []>} : vector<64x8xbf16>, vector<8x8xbf16>, vector<64x8xf32> -> vector<64x8xf32>
    %81 = arith.addf %74, %80 : vector<64x8xf32>
    %c1_89 = arith.constant 1 : index
    %c1_90 = arith.constant 1 : index
    %c0_91 = arith.constant 0 : index
    %82 = vector.load %arg15[%c1_89, %c1_90, %c0_91] : memref<9x9x8xf32, #tpu.memory_space<vmem>>, vector<8x8x8xf32>
    %83 = vector.shape_cast %82 : vector<8x8x8xf32> to vector<64x8xf32>
    %84 = arith.truncf %83 : vector<64x8xf32> to vector<64x8xbf16>
    %c1_92 = arith.constant 1 : index
    %c2_93 = arith.constant 2 : index
    %c0_94 = arith.constant 0 : index
    %c0_95 = arith.constant 0 : index
    %85 = vector.load %arg5[%c1_92, %c2_93, %c0_94, %c0_95] : memref<3x3x8x8xbf16, #tpu.memory_space<vmem>>, vector<1x1x8x8xbf16>
    %86 = vector.shape_cast %85 : vector<1x1x8x8xbf16> to vector<8x8xbf16>
    %cst_96 = arith.constant dense<0.000000e+00> : vector<64x8xf32>
    %87 = tpu.matmul %84, %86, %cst_96 {dimension_numbers = #tpu.dot_dimension_numbers<[1], [0], [0], [1], [0, 0, 1, 1], [], []>} : vector<64x8xbf16>, vector<8x8xbf16>, vector<64x8xf32> -> vector<64x8xf32>
    %88 = arith.addf %81, %87 : vector<64x8xf32>
    %c1_97 = arith.constant 1 : index
    %c0_98 = arith.constant 0 : index
    %c0_99 = arith.constant 0 : index
    %89 = vector.load %arg17[%c1_97, %c0_98, %c0_99] : memref<9x9x8xf32, #tpu.memory_space<vmem>>, vector<8x8x8xf32>
    %90 = vector.shape_cast %89 : vector<8x8x8xf32> to vector<64x8xf32>
    %91 = arith.truncf %90 : vector<64x8xf32> to vector<64x8xbf16>
    %c2_100 = arith.constant 2 : index
    %c0_101 = arith.constant 0 : index
    %c0_102 = arith.constant 0 : index
    %c0_103 = arith.constant 0 : index
    %92 = vector.load %arg5[%c2_100, %c0_101, %c0_102, %c0_103] : memref<3x3x8x8xbf16, #tpu.memory_space<vmem>>, vector<1x1x8x8xbf16>
    %93 = vector.shape_cast %92 : vector<1x1x8x8xbf16> to vector<8x8xbf16>
    %cst_104 = arith.constant dense<0.000000e+00> : vector<64x8xf32>
    %94 = tpu.matmul %91, %93, %cst_104 {dimension_numbers = #tpu.dot_dimension_numbers<[1], [0], [0], [1], [0, 0, 1, 1], [], []>} : vector<64x8xbf16>, vector<8x8xbf16>, vector<64x8xf32> -> vector<64x8xf32>
    %95 = arith.addf %88, %94 : vector<64x8xf32>
    %c1_105 = arith.constant 1 : index
    %c1_106 = arith.constant 1 : index
    %c0_107 = arith.constant 0 : index
    %96 = vector.load %arg16[%c1_105, %c1_106, %c0_107] : memref<9x9x8xf32, #tpu.memory_space<vmem>>, vector<8x8x8xf32>
    %97 = vector.shape_cast %96 : vector<8x8x8xf32> to vector<64x8xf32>
    %98 = arith.truncf %97 : vector<64x8xf32> to vector<64x8xbf16>
    %c2_108 = arith.constant 2 : index
    %c1_109 = arith.constant 1 : index
    %c0_110 = arith.constant 0 : index
    %c0_111 = arith.constant 0 : index
    %99 = vector.load %arg5[%c2_108, %c1_109, %c0_110, %c0_111] : memref<3x3x8x8xbf16, #tpu.memory_space<vmem>>, vector<1x1x8x8xbf16>
    %100 = vector.shape_cast %99 : vector<1x1x8x8xbf16> to vector<8x8xbf16>
    %cst_112 = arith.constant dense<0.000000e+00> : vector<64x8xf32>
    %101 = tpu.matmul %98, %100, %cst_112 {dimension_numbers = #tpu.dot_dimension_numbers<[1], [0], [0], [1], [0, 0, 1, 1], [], []>} : vector<64x8xbf16>, vector<8x8xbf16>, vector<64x8xf32> -> vector<64x8xf32>
    %102 = arith.addf %95, %101 : vector<64x8xf32>
    %c1_113 = arith.constant 1 : index
    %c1_114 = arith.constant 1 : index
    %c0_115 = arith.constant 0 : index
    %103 = vector.load %arg17[%c1_113, %c1_114, %c0_115] : memref<9x9x8xf32, #tpu.memory_space<vmem>>, vector<8x8x8xf32>
    %104 = vector.shape_cast %103 : vector<8x8x8xf32> to vector<64x8xf32>
    %105 = arith.truncf %104 : vector<64x8xf32> to vector<64x8xbf16>
    %c2_116 = arith.constant 2 : index
    %c2_117 = arith.constant 2 : index
    %c0_118 = arith.constant 0 : index
    %c0_119 = arith.constant 0 : index
    %106 = vector.load %arg5[%c2_116, %c2_117, %c0_118, %c0_119] : memref<3x3x8x8xbf16, #tpu.memory_space<vmem>>, vector<1x1x8x8xbf16>
    %107 = vector.shape_cast %106 : vector<1x1x8x8xbf16> to vector<8x8xbf16>
    %cst_120 = arith.constant dense<0.000000e+00> : vector<64x8xf32>
    %108 = tpu.matmul %105, %107, %cst_120 {dimension_numbers = #tpu.dot_dimension_numbers<[1], [0], [0], [1], [0, 0, 1, 1], [], []>} : vector<64x8xbf16>, vector<8x8xbf16>, vector<64x8xf32> -> vector<64x8xf32>
    %109 = arith.addf %102, %108 : vector<64x8xf32>
    %c0_121 = arith.constant 0 : index
    %c0_122 = arith.constant 0 : index
    %110 = vector.load %arg6[%c0_121, %c0_122] : memref<1x8xf32, #tpu.memory_space<vmem>>, vector<1x8xf32>
    %111 = vector.broadcast %110 : vector<1x8xf32> to vector<64x8xf32>
    %112 = arith.addf %109, %111 : vector<64x8xf32>
    %113 = arith.negf %112 : vector<64x8xf32>
    %114 = math.exp %113 : vector<64x8xf32>
    %cst_123 = arith.constant 1.000000e+00 : f32
    %115 = vector.broadcast %cst_123 : f32 to vector<64x8xf32>
    %116 = arith.addf %115, %114 : vector<64x8xf32>
    %117 = arith.divf %115, %116 : vector<64x8xf32>
    %118 = arith.mulf %112, %117 : vector<64x8xf32>
    %119 = vector.shape_cast %118 : vector<64x8xf32> to vector<8x8x8xf32>
    %c1_124 = arith.constant 1 : index
    %c1_125 = arith.constant 1 : index
    %c0_126 = arith.constant 0 : index
    %120 = vector.load %arg18[%c1_124, %c1_125, %c0_126] : memref<10x10x8xf32, #tpu.memory_space<vmem>>, vector<8x8x8xf32>
    tpu.vector_store %arg18[%c1_124, %c1_125, %c0_126], %119 {strides = array<i32>} : memref<10x10x8xf32, #tpu.memory_space<vmem>>, vector<8x8x8xf32>,
    %cst_127 = arith.constant 0.000000e+00 : f32
    %121 = vector.broadcast %cst_127 : f32 to vector<64x8xf32>
    %c0_128 = arith.constant 0 : index
    %c0_129 = arith.constant 0 : index
    %c0_130 = arith.constant 0 : index
    %122 = vector.load %arg18[%c0_128, %c0_129, %c0_130] : memref<10x10x8xf32, #tpu.memory_space<vmem>>, vector<8x8x8xf32>
    %123 = vector.shape_cast %122 : vector<8x8x8xf32> to vector<64x8xf32>
    %124 = arith.truncf %123 : vector<64x8xf32> to vector<64x8xbf16>
    %c0_131 = arith.constant 0 : index
    %c0_132 = arith.constant 0 : index
    %c0_133 = arith.constant 0 : index
    %c0_134 = arith.constant 0 : index
    %125 = vector.load %arg7[%c0_131, %c0_132, %c0_133, %c0_134] : memref<3x3x8x8xbf16, #tpu.memory_space<vmem>>, vector<1x1x8x8xbf16>
    %126 = vector.shape_cast %125 : vector<1x1x8x8xbf16> to vector<8x8xbf16>
    %cst_135 = arith.constant dense<0.000000e+00> : vector<64x8xf32>
    %127 = tpu.matmul %124, %126, %cst_135 {dimension_numbers = #tpu.dot_dimension_numbers<[1], [0], [0], [1], [0, 0, 1, 1], [], []>} : vector<64x8xbf16>, vector<8x8xbf16>, vector<64x8xf32> -> vector<64x8xf32>
    %128 = arith.addf %121, %127 : vector<64x8xf32>
    %c0_136 = arith.constant 0 : index
    %c1_137 = arith.constant 1 : index
    %c0_138 = arith.constant 0 : index
    %129 = vector.load %arg18[%c0_136, %c1_137, %c0_138] : memref<10x10x8xf32, #tpu.memory_space<vmem>>, vector<8x8x8xf32>
    %130 = vector.shape_cast %129 : vector<8x8x8xf32> to vector<64x8xf32>
    %131 = arith.truncf %130 : vector<64x8xf32> to vector<64x8xbf16>
    %c0_139 = arith.constant 0 : index
    %c1_140 = arith.constant 1 : index
    %c0_141 = arith.constant 0 : index
    %c0_142 = arith.constant 0 : index
    %132 = vector.load %arg7[%c0_139, %c1_140, %c0_141, %c0_142] : memref<3x3x8x8xbf16, #tpu.memory_space<vmem>>, vector<1x1x8x8xbf16>
    %133 = vector.shape_cast %132 : vector<1x1x8x8xbf16> to vector<8x8xbf16>
    %cst_143 = arith.constant dense<0.000000e+00> : vector<64x8xf32>
    %134 = tpu.matmul %131, %133, %cst_143 {dimension_numbers = #tpu.dot_dimension_numbers<[1], [0], [0], [1], [0, 0, 1, 1], [], []>} : vector<64x8xbf16>, vector<8x8xbf16>, vector<64x8xf32> -> vector<64x8xf32>
    %135 = arith.addf %128, %134 : vector<64x8xf32>
    %c0_144 = arith.constant 0 : index
    %c2_145 = arith.constant 2 : index
    %c0_146 = arith.constant 0 : index
    %136 = vector.load %arg18[%c0_144, %c2_145, %c0_146] : memref<10x10x8xf32, #tpu.memory_space<vmem>>, vector<8x8x8xf32>
    %137 = vector.shape_cast %136 : vector<8x8x8xf32> to vector<64x8xf32>
    %138 = arith.truncf %137 : vector<64x8xf32> to vector<64x8xbf16>
    %c0_147 = arith.constant 0 : index
    %c2_148 = arith.constant 2 : index
    %c0_149 = arith.constant 0 : index
    %c0_150 = arith.constant 0 : index
    %139 = vector.load %arg7[%c0_147, %c2_148, %c0_149, %c0_150] : memref<3x3x8x8xbf16, #tpu.memory_space<vmem>>, vector<1x1x8x8xbf16>
    %140 = vector.shape_cast %139 : vector<1x1x8x8xbf16> to vector<8x8xbf16>
    %cst_151 = arith.constant dense<0.000000e+00> : vector<64x8xf32>
    %141 = tpu.matmul %138, %140, %cst_151 {dimension_numbers = #tpu.dot_dimension_numbers<[1], [0], [0], [1], [0, 0, 1, 1], [], []>} : vector<64x8xbf16>, vector<8x8xbf16>, vector<64x8xf32> -> vector<64x8xf32>
    %142 = arith.addf %135, %141 : vector<64x8xf32>
    %c1_152 = arith.constant 1 : index
    %c0_153 = arith.constant 0 : index
    %c0_154 = arith.constant 0 : index
    %143 = vector.load %arg18[%c1_152, %c0_153, %c0_154] : memref<10x10x8xf32, #tpu.memory_space<vmem>>, vector<8x8x8xf32>
    %144 = vector.shape_cast %143 : vector<8x8x8xf32> to vector<64x8xf32>
    %145 = arith.truncf %144 : vector<64x8xf32> to vector<64x8xbf16>
    %c1_155 = arith.constant 1 : index
    %c0_156 = arith.constant 0 : index
    %c0_157 = arith.constant 0 : index
    %c0_158 = arith.constant 0 : index
    %146 = vector.load %arg7[%c1_155, %c0_156, %c0_157, %c0_158] : memref<3x3x8x8xbf16, #tpu.memory_space<vmem>>, vector<1x1x8x8xbf16>
    %147 = vector.shape_cast %146 : vector<1x1x8x8xbf16> to vector<8x8xbf16>
    %cst_159 = arith.constant dense<0.000000e+00> : vector<64x8xf32>
    %148 = tpu.matmul %145, %147, %cst_159 {dimension_numbers = #tpu.dot_dimension_numbers<[1], [0], [0], [1], [0, 0, 1, 1], [], []>} : vector<64x8xbf16>, vector<8x8xbf16>, vector<64x8xf32> -> vector<64x8xf32>
    %149 = arith.addf %142, %148 : vector<64x8xf32>
    %c1_160 = arith.constant 1 : index
    %c1_161 = arith.constant 1 : index
    %c0_162 = arith.constant 0 : index
    %150 = vector.load %arg18[%c1_160, %c1_161, %c0_162] : memref<10x10x8xf32, #tpu.memory_space<vmem>>, vector<8x8x8xf32>
    %151 = vector.shape_cast %150 : vector<8x8x8xf32> to vector<64x8xf32>
    %152 = arith.truncf %151 : vector<64x8xf32> to vector<64x8xbf16>
    %c1_163 = arith.constant 1 : index
    %c1_164 = arith.constant 1 : index
    %c0_165 = arith.constant 0 : index
    %c0_166 = arith.constant 0 : index
    %153 = vector.load %arg7[%c1_163, %c1_164, %c0_165, %c0_166] : memref<3x3x8x8xbf16, #tpu.memory_space<vmem>>, vector<1x1x8x8xbf16>
    %154 = vector.shape_cast %153 : vector<1x1x8x8xbf16> to vector<8x8xbf16>
    %cst_167 = arith.constant dense<0.000000e+00> : vector<64x8xf32>
    %155 = tpu.matmul %152, %154, %cst_167 {dimension_numbers = #tpu.dot_dimension_numbers<[1], [0], [0], [1], [0, 0, 1, 1], [], []>} : vector<64x8xbf16>, vector<8x8xbf16>, vector<64x8xf32> -> vector<64x8xf32>
    %156 = arith.addf %149, %155 : vector<64x8xf32>
    %c1_168 = arith.constant 1 : index
    %c2_169 = arith.constant 2 : index
    %c0_170 = arith.constant 0 : index
    %157 = vector.load %arg18[%c1_168, %c2_169, %c0_170] : memref<10x10x8xf32, #tpu.memory_space<vmem>>, vector<8x8x8xf32>
    %158 = vector.shape_cast %157 : vector<8x8x8xf32> to vector<64x8xf32>
    %159 = arith.truncf %158 : vector<64x8xf32> to vector<64x8xbf16>
    %c1_171 = arith.constant 1 : index
    %c2_172 = arith.constant 2 : index
    %c0_173 = arith.constant 0 : index
    %c0_174 = arith.constant 0 : index
    %160 = vector.load %arg7[%c1_171, %c2_172, %c0_173, %c0_174] : memref<3x3x8x8xbf16, #tpu.memory_space<vmem>>, vector<1x1x8x8xbf16>
    %161 = vector.shape_cast %160 : vector<1x1x8x8xbf16> to vector<8x8xbf16>
    %cst_175 = arith.constant dense<0.000000e+00> : vector<64x8xf32>
    %162 = tpu.matmul %159, %161, %cst_175 {dimension_numbers = #tpu.dot_dimension_numbers<[1], [0], [0], [1], [0, 0, 1, 1], [], []>} : vector<64x8xbf16>, vector<8x8xbf16>, vector<64x8xf32> -> vector<64x8xf32>
    %163 = arith.addf %156, %162 : vector<64x8xf32>
    %c2_176 = arith.constant 2 : index
    %c0_177 = arith.constant 0 : index
    %c0_178 = arith.constant 0 : index
    %164 = vector.load %arg18[%c2_176, %c0_177, %c0_178] : memref<10x10x8xf32, #tpu.memory_space<vmem>>, vector<8x8x8xf32>
    %165 = vector.shape_cast %164 : vector<8x8x8xf32> to vector<64x8xf32>
    %166 = arith.truncf %165 : vector<64x8xf32> to vector<64x8xbf16>
    %c2_179 = arith.constant 2 : index
    %c0_180 = arith.constant 0 : index
    %c0_181 = arith.constant 0 : index
    %c0_182 = arith.constant 0 : index
    %167 = vector.load %arg7[%c2_179, %c0_180, %c0_181, %c0_182] : memref<3x3x8x8xbf16, #tpu.memory_space<vmem>>, vector<1x1x8x8xbf16>
    %168 = vector.shape_cast %167 : vector<1x1x8x8xbf16> to vector<8x8xbf16>
    %cst_183 = arith.constant dense<0.000000e+00> : vector<64x8xf32>
    %169 = tpu.matmul %166, %168, %cst_183 {dimension_numbers = #tpu.dot_dimension_numbers<[1], [0], [0], [1], [0, 0, 1, 1], [], []>} : vector<64x8xbf16>, vector<8x8xbf16>, vector<64x8xf32> -> vector<64x8xf32>
    %170 = arith.addf %163, %169 : vector<64x8xf32>
    %c2_184 = arith.constant 2 : index
    %c1_185 = arith.constant 1 : index
    %c0_186 = arith.constant 0 : index
    %171 = vector.load %arg18[%c2_184, %c1_185, %c0_186] : memref<10x10x8xf32, #tpu.memory_space<vmem>>, vector<8x8x8xf32>
    %172 = vector.shape_cast %171 : vector<8x8x8xf32> to vector<64x8xf32>
    %173 = arith.truncf %172 : vector<64x8xf32> to vector<64x8xbf16>
    %c2_187 = arith.constant 2 : index
    %c1_188 = arith.constant 1 : index
    %c0_189 = arith.constant 0 : index
    %c0_190 = arith.constant 0 : index
    %174 = vector.load %arg7[%c2_187, %c1_188, %c0_189, %c0_190] : memref<3x3x8x8xbf16, #tpu.memory_space<vmem>>, vector<1x1x8x8xbf16>
    %175 = vector.shape_cast %174 : vector<1x1x8x8xbf16> to vector<8x8xbf16>
    %cst_191 = arith.constant dense<0.000000e+00> : vector<64x8xf32>
    %176 = tpu.matmul %173, %175, %cst_191 {dimension_numbers = #tpu.dot_dimension_numbers<[1], [0], [0], [1], [0, 0, 1, 1], [], []>} : vector<64x8xbf16>, vector<8x8xbf16>, vector<64x8xf32> -> vector<64x8xf32>
    %177 = arith.addf %170, %176 : vector<64x8xf32>
    %c2_192 = arith.constant 2 : index
    %c2_193 = arith.constant 2 : index
    %c0_194 = arith.constant 0 : index
    %178 = vector.load %arg18[%c2_192, %c2_193, %c0_194] : memref<10x10x8xf32, #tpu.memory_space<vmem>>, vector<8x8x8xf32>
    %179 = vector.shape_cast %178 : vector<8x8x8xf32> to vector<64x8xf32>
    %180 = arith.truncf %179 : vector<64x8xf32> to vector<64x8xbf16>
    %c2_195 = arith.constant 2 : index
    %c2_196 = arith.constant 2 : index
    %c0_197 = arith.constant 0 : index
    %c0_198 = arith.constant 0 : index
    %181 = vector.load %arg7[%c2_195, %c2_196, %c0_197, %c0_198] : memref<3x3x8x8xbf16, #tpu.memory_space<vmem>>, vector<1x1x8x8xbf16>
    %182 = vector.shape_cast %181 : vector<1x1x8x8xbf16> to vector<8x8xbf16>
    %cst_199 = arith.constant dense<0.000000e+00> : vector<64x8xf32>
    %183 = tpu.matmul %180, %182, %cst_199 {dimension_numbers = #tpu.dot_dimension_numbers<[1], [0], [0], [1], [0, 0, 1, 1], [], []>} : vector<64x8xbf16>, vector<8x8xbf16>, vector<64x8xf32> -> vector<64x8xf32>
    %184 = arith.addf %177, %183 : vector<64x8xf32>
    %c0_200 = arith.constant 0 : index
    %c0_201 = arith.constant 0 : index
    %185 = vector.load %arg8[%c0_200, %c0_201] : memref<1x8xf32, #tpu.memory_space<vmem>>, vector<1x8xf32>
    %186 = vector.broadcast %185 : vector<1x8xf32> to vector<64x8xf32>
    %187 = arith.addf %184, %186 : vector<64x8xf32>
    %188 = arith.negf %187 : vector<64x8xf32>
    %189 = math.exp %188 : vector<64x8xf32>
    %cst_202 = arith.constant 1.000000e+00 : f32
    %190 = vector.broadcast %cst_202 : f32 to vector<64x8xf32>
    %191 = arith.addf %190, %189 : vector<64x8xf32>
    %192 = arith.divf %190, %191 : vector<64x8xf32>
    %193 = arith.mulf %187, %192 : vector<64x8xf32>
    %194 = vector.shape_cast %193 : vector<64x8xf32> to vector<8x8x8xf32>
    %c1_203 = arith.constant 1 : index
    %c1_204 = arith.constant 1 : index
    %c0_205 = arith.constant 0 : index
    %195 = vector.load %arg18[%c1_203, %c1_204, %c0_205] : memref<10x10x8xf32, #tpu.memory_space<vmem>>, vector<8x8x8xf32>
    tpu.vector_store %arg18[%c1_203, %c1_204, %c0_205], %194 {strides = array<i32>} : memref<10x10x8xf32, #tpu.memory_space<vmem>>, vector<8x8x8xf32>,
    %cst_206 = arith.constant 0.000000e+00 : f32
    %196 = vector.broadcast %cst_206 : f32 to vector<64x8xf32>
    %c0_207 = arith.constant 0 : index
    %c0_208 = arith.constant 0 : index
    %c0_209 = arith.constant 0 : index
    %197 = vector.load %arg18[%c0_207, %c0_208, %c0_209] : memref<10x10x8xf32, #tpu.memory_space<vmem>>, vector<8x8x8xf32>
    %198 = vector.shape_cast %197 : vector<8x8x8xf32> to vector<64x8xf32>
    %199 = arith.truncf %198 : vector<64x8xf32> to vector<64x8xbf16>
    %c0_210 = arith.constant 0 : index
    %c0_211 = arith.constant 0 : index
    %c0_212 = arith.constant 0 : index
    %c0_213 = arith.constant 0 : index
    %200 = vector.load %arg9[%c0_210, %c0_211, %c0_212, %c0_213] : memref<3x3x8x8xbf16, #tpu.memory_space<vmem>>, vector<1x1x8x8xbf16>
    %201 = vector.shape_cast %200 : vector<1x1x8x8xbf16> to vector<8x8xbf16>
    %cst_214 = arith.constant dense<0.000000e+00> : vector<64x8xf32>
    %202 = tpu.matmul %199, %201, %cst_214 {dimension_numbers = #tpu.dot_dimension_numbers<[1], [0], [0], [1], [0, 0, 1, 1], [], []>} : vector<64x8xbf16>, vector<8x8xbf16>, vector<64x8xf32> -> vector<64x8xf32>
    %203 = arith.addf %196, %202 : vector<64x8xf32>
    %c0_215 = arith.constant 0 : index
    %c1_216 = arith.constant 1 : index
    %c0_217 = arith.constant 0 : index
    %204 = vector.load %arg18[%c0_215, %c1_216, %c0_217] : memref<10x10x8xf32, #tpu.memory_space<vmem>>, vector<8x8x8xf32>
    %205 = vector.shape_cast %204 : vector<8x8x8xf32> to vector<64x8xf32>
    %206 = arith.truncf %205 : vector<64x8xf32> to vector<64x8xbf16>
    %c0_218 = arith.constant 0 : index
    %c1_219 = arith.constant 1 : index
    %c0_220 = arith.constant 0 : index
    %c0_221 = arith.constant 0 : index
    %207 = vector.load %arg9[%c0_218, %c1_219, %c0_220, %c0_221] : memref<3x3x8x8xbf16, #tpu.memory_space<vmem>>, vector<1x1x8x8xbf16>
    %208 = vector.shape_cast %207 : vector<1x1x8x8xbf16> to vector<8x8xbf16>
    %cst_222 = arith.constant dense<0.000000e+00> : vector<64x8xf32>
    %209 = tpu.matmul %206, %208, %cst_222 {dimension_numbers = #tpu.dot_dimension_numbers<[1], [0], [0], [1], [0, 0, 1, 1], [], []>} : vector<64x8xbf16>, vector<8x8xbf16>, vector<64x8xf32> -> vector<64x8xf32>
    %210 = arith.addf %203, %209 : vector<64x8xf32>
    %c0_223 = arith.constant 0 : index
    %c2_224 = arith.constant 2 : index
    %c0_225 = arith.constant 0 : index
    %211 = vector.load %arg18[%c0_223, %c2_224, %c0_225] : memref<10x10x8xf32, #tpu.memory_space<vmem>>, vector<8x8x8xf32>
    %212 = vector.shape_cast %211 : vector<8x8x8xf32> to vector<64x8xf32>
    %213 = arith.truncf %212 : vector<64x8xf32> to vector<64x8xbf16>
    %c0_226 = arith.constant 0 : index
    %c2_227 = arith.constant 2 : index
    %c0_228 = arith.constant 0 : index
    %c0_229 = arith.constant 0 : index
    %214 = vector.load %arg9[%c0_226, %c2_227, %c0_228, %c0_229] : memref<3x3x8x8xbf16, #tpu.memory_space<vmem>>, vector<1x1x8x8xbf16>
    %215 = vector.shape_cast %214 : vector<1x1x8x8xbf16> to vector<8x8xbf16>
    %cst_230 = arith.constant dense<0.000000e+00> : vector<64x8xf32>
    %216 = tpu.matmul %213, %215, %cst_230 {dimension_numbers = #tpu.dot_dimension_numbers<[1], [0], [0], [1], [0, 0, 1, 1], [], []>} : vector<64x8xbf16>, vector<8x8xbf16>, vector<64x8xf32> -> vector<64x8xf32>
    %217 = arith.addf %210, %216 : vector<64x8xf32>
    %c1_231 = arith.constant 1 : index
    %c0_232 = arith.constant 0 : index
    %c0_233 = arith.constant 0 : index
    %218 = vector.load %arg18[%c1_231, %c0_232, %c0_233] : memref<10x10x8xf32, #tpu.memory_space<vmem>>, vector<8x8x8xf32>
    %219 = vector.shape_cast %218 : vector<8x8x8xf32> to vector<64x8xf32>
    %220 = arith.truncf %219 : vector<64x8xf32> to vector<64x8xbf16>
    %c1_234 = arith.constant 1 : index
    %c0_235 = arith.constant 0 : index
    %c0_236 = arith.constant 0 : index
    %c0_237 = arith.constant 0 : index
    %221 = vector.load %arg9[%c1_234, %c0_235, %c0_236, %c0_237] : memref<3x3x8x8xbf16, #tpu.memory_space<vmem>>, vector<1x1x8x8xbf16>
    %222 = vector.shape_cast %221 : vector<1x1x8x8xbf16> to vector<8x8xbf16>
    %cst_238 = arith.constant dense<0.000000e+00> : vector<64x8xf32>
    %223 = tpu.matmul %220, %222, %cst_238 {dimension_numbers = #tpu.dot_dimension_numbers<[1], [0], [0], [1], [0, 0, 1, 1], [], []>} : vector<64x8xbf16>, vector<8x8xbf16>, vector<64x8xf32> -> vector<64x8xf32>
    %224 = arith.addf %217, %223 : vector<64x8xf32>
    %c1_239 = arith.constant 1 : index
    %c1_240 = arith.constant 1 : index
    %c0_241 = arith.constant 0 : index
    %225 = vector.load %arg18[%c1_239, %c1_240, %c0_241] : memref<10x10x8xf32, #tpu.memory_space<vmem>>, vector<8x8x8xf32>
    %226 = vector.shape_cast %225 : vector<8x8x8xf32> to vector<64x8xf32>
    %227 = arith.truncf %226 : vector<64x8xf32> to vector<64x8xbf16>
    %c1_242 = arith.constant 1 : index
    %c1_243 = arith.constant 1 : index
    %c0_244 = arith.constant 0 : index
    %c0_245 = arith.constant 0 : index
    %228 = vector.load %arg9[%c1_242, %c1_243, %c0_244, %c0_245] : memref<3x3x8x8xbf16, #tpu.memory_space<vmem>>, vector<1x1x8x8xbf16>
    %229 = vector.shape_cast %228 : vector<1x1x8x8xbf16> to vector<8x8xbf16>
    %cst_246 = arith.constant dense<0.000000e+00> : vector<64x8xf32>
    %230 = tpu.matmul %227, %229, %cst_246 {dimension_numbers = #tpu.dot_dimension_numbers<[1], [0], [0], [1], [0, 0, 1, 1], [], []>} : vector<64x8xbf16>, vector<8x8xbf16>, vector<64x8xf32> -> vector<64x8xf32>
    %231 = arith.addf %224, %230 : vector<64x8xf32>
    %c1_247 = arith.constant 1 : index
    %c2_248 = arith.constant 2 : index
    %c0_249 = arith.constant 0 : index
    %232 = vector.load %arg18[%c1_247, %c2_248, %c0_249] : memref<10x10x8xf32, #tpu.memory_space<vmem>>, vector<8x8x8xf32>
    %233 = vector.shape_cast %232 : vector<8x8x8xf32> to vector<64x8xf32>
    %234 = arith.truncf %233 : vector<64x8xf32> to vector<64x8xbf16>
    %c1_250 = arith.constant 1 : index
    %c2_251 = arith.constant 2 : index
    %c0_252 = arith.constant 0 : index
    %c0_253 = arith.constant 0 : index
    %235 = vector.load %arg9[%c1_250, %c2_251, %c0_252, %c0_253] : memref<3x3x8x8xbf16, #tpu.memory_space<vmem>>, vector<1x1x8x8xbf16>
    %236 = vector.shape_cast %235 : vector<1x1x8x8xbf16> to vector<8x8xbf16>
    %cst_254 = arith.constant dense<0.000000e+00> : vector<64x8xf32>
    %237 = tpu.matmul %234, %236, %cst_254 {dimension_numbers = #tpu.dot_dimension_numbers<[1], [0], [0], [1], [0, 0, 1, 1], [], []>} : vector<64x8xbf16>, vector<8x8xbf16>, vector<64x8xf32> -> vector<64x8xf32>
    %238 = arith.addf %231, %237 : vector<64x8xf32>
    %c2_255 = arith.constant 2 : index
    %c0_256 = arith.constant 0 : index
    %c0_257 = arith.constant 0 : index
    %239 = vector.load %arg18[%c2_255, %c0_256, %c0_257] : memref<10x10x8xf32, #tpu.memory_space<vmem>>, vector<8x8x8xf32>
    %240 = vector.shape_cast %239 : vector<8x8x8xf32> to vector<64x8xf32>
    %241 = arith.truncf %240 : vector<64x8xf32> to vector<64x8xbf16>
    %c2_258 = arith.constant 2 : index
    %c0_259 = arith.constant 0 : index
    %c0_260 = arith.constant 0 : index
    %c0_261 = arith.constant 0 : index
    %242 = vector.load %arg9[%c2_258, %c0_259, %c0_260, %c0_261] : memref<3x3x8x8xbf16, #tpu.memory_space<vmem>>, vector<1x1x8x8xbf16>
    %243 = vector.shape_cast %242 : vector<1x1x8x8xbf16> to vector<8x8xbf16>
    %cst_262 = arith.constant dense<0.000000e+00> : vector<64x8xf32>
    %244 = tpu.matmul %241, %243, %cst_262 {dimension_numbers = #tpu.dot_dimension_numbers<[1], [0], [0], [1], [0, 0, 1, 1], [], []>} : vector<64x8xbf16>, vector<8x8xbf16>, vector<64x8xf32> -> vector<64x8xf32>
    %245 = arith.addf %238, %244 : vector<64x8xf32>
    %c2_263 = arith.constant 2 : index
    %c1_264 = arith.constant 1 : index
    %c0_265 = arith.constant 0 : index
    %246 = vector.load %arg18[%c2_263, %c1_264, %c0_265] : memref<10x10x8xf32, #tpu.memory_space<vmem>>, vector<8x8x8xf32>
    %247 = vector.shape_cast %246 : vector<8x8x8xf32> to vector<64x8xf32>
    %248 = arith.truncf %247 : vector<64x8xf32> to vector<64x8xbf16>
    %c2_266 = arith.constant 2 : index
    %c1_267 = arith.constant 1 : index
    %c0_268 = arith.constant 0 : index
    %c0_269 = arith.constant 0 : index
    %249 = vector.load %arg9[%c2_266, %c1_267, %c0_268, %c0_269] : memref<3x3x8x8xbf16, #tpu.memory_space<vmem>>, vector<1x1x8x8xbf16>
    %250 = vector.shape_cast %249 : vector<1x1x8x8xbf16> to vector<8x8xbf16>
    %cst_270 = arith.constant dense<0.000000e+00> : vector<64x8xf32>
    %251 = tpu.matmul %248, %250, %cst_270 {dimension_numbers = #tpu.dot_dimension_numbers<[1], [0], [0], [1], [0, 0, 1, 1], [], []>} : vector<64x8xbf16>, vector<8x8xbf16>, vector<64x8xf32> -> vector<64x8xf32>
    %252 = arith.addf %245, %251 : vector<64x8xf32>
    %c2_271 = arith.constant 2 : index
    %c2_272 = arith.constant 2 : index
    %c0_273 = arith.constant 0 : index
    %253 = vector.load %arg18[%c2_271, %c2_272, %c0_273] : memref<10x10x8xf32, #tpu.memory_space<vmem>>, vector<8x8x8xf32>
    %254 = vector.shape_cast %253 : vector<8x8x8xf32> to vector<64x8xf32>
    %255 = arith.truncf %254 : vector<64x8xf32> to vector<64x8xbf16>
    %c2_274 = arith.constant 2 : index
    %c2_275 = arith.constant 2 : index
    %c0_276 = arith.constant 0 : index
    %c0_277 = arith.constant 0 : index
    %256 = vector.load %arg9[%c2_274, %c2_275, %c0_276, %c0_277] : memref<3x3x8x8xbf16, #tpu.memory_space<vmem>>, vector<1x1x8x8xbf16>
    %257 = vector.shape_cast %256 : vector<1x1x8x8xbf16> to vector<8x8xbf16>
    %cst_278 = arith.constant dense<0.000000e+00> : vector<64x8xf32>
    %258 = tpu.matmul %255, %257, %cst_278 {dimension_numbers = #tpu.dot_dimension_numbers<[1], [0], [0], [1], [0, 0, 1, 1], [], []>} : vector<64x8xbf16>, vector<8x8xbf16>, vector<64x8xf32> -> vector<64x8xf32>
    %259 = arith.addf %252, %258 : vector<64x8xf32>
    %c0_279 = arith.constant 0 : index
    %c0_280 = arith.constant 0 : index
    %260 = vector.load %arg10[%c0_279, %c0_280] : memref<1x8xf32, #tpu.memory_space<vmem>>, vector<1x8xf32>
    %261 = vector.broadcast %260 : vector<1x8xf32> to vector<64x8xf32>
    %262 = arith.addf %259, %261 : vector<64x8xf32>
    %c0_281 = arith.constant 0 : index
    %c0_282 = arith.constant 0 : index
    %c0_283 = arith.constant 0 : index
    %c0_284 = arith.constant 0 : index
    %263 = vector.load %arg1[%c0_281, %c0_282, %c0_283, %c0_284] : memref<1x8x8x8xf32, #tpu.memory_space<vmem>>, vector<1x8x8x8xf32>
    %264 = vector.shape_cast %263 : vector<1x8x8x8xf32> to vector<8x8x8xf32>
    %265 = vector.shape_cast %264 : vector<8x8x8xf32> to vector<64x8xf32>
    %266 = arith.truncf %265 : vector<64x8xf32> to vector<64x8xbf16>
    %c0_285 = arith.constant 0 : index
    %c0_286 = arith.constant 0 : index
    %267 = vector.load %arg11[%c0_285, %c0_286] : memref<8x8xbf16, #tpu.memory_space<vmem>>, vector<8x8xbf16>
    %cst_287 = arith.constant dense<0.000000e+00> : vector<64x8xf32>
    %268 = tpu.matmul %266, %267, %cst_287 {dimension_numbers = #tpu.dot_dimension_numbers<[1], [0], [0], [1], [0, 0, 1, 1], [], []>} : vector<64x8xbf16>, vector<8x8xbf16>, vector<64x8xf32> -> vector<64x8xf32>
    %c0_288 = arith.constant 0 : index
    %c0_289 = arith.constant 0 : index
    %269 = vector.load %arg12[%c0_288, %c0_289] : memref<1x8xf32, #tpu.memory_space<vmem>>, vector<1x8xf32>
    %270 = vector.broadcast %269 : vector<1x8xf32> to vector<64x8xf32>
    %271 = arith.addf %268, %270 : vector<64x8xf32>
    %272 = arith.addf %262, %271 : vector<64x8xf32>
    %273 = vector.shape_cast %272 : vector<64x8xf32> to vector<1x8x8x8xf32>
    %c0_290 = arith.constant 0 : index
    %c0_291 = arith.constant 0 : index
    %c0_292 = arith.constant 0 : index
    %c0_293 = arith.constant 0 : index
    %274 = vector.load %arg13[%c0_290, %c0_291, %c0_292, %c0_293] : memref<1x8x8x8xf32, #tpu.memory_space<vmem>>, vector<1x8x8x8xf32>
    tpu.vector_store %arg13[%c0_290, %c0_291, %c0_292, %c0_293], %273 {strides = array<i32>} : memref<1x8x8x8xf32, #tpu.memory_space<vmem>>, vector<1x8x8x8xf32>,
    return
  }
  func.func @transform_0(%arg0: i32) -> (i32, i32, i32, i32) {
    %c0_i32 = arith.constant 0 : i32
    %c0_i32_0 = arith.constant 0 : i32
    %c0_i32_1 = arith.constant 0 : i32
    %c0_i32_2 = arith.constant 0 : i32
    return %arg0, %c0_i32, %c0_i32_0, %c0_i32_1 : i32, i32, i32, i32
  }
  func.func @transform_1(%arg0: i32) -> (i32, i32, i32, i32) {
    %c0_i32 = arith.constant 0 : i32
    %c0_i32_0 = arith.constant 0 : i32
    %c0_i32_1 = arith.constant 0 : i32
    %c0_i32_2 = arith.constant 0 : i32
    return %arg0, %c0_i32, %c0_i32_0, %c0_i32_1 : i32, i32, i32, i32
  }
  func.func @transform_2(%arg0: i32) -> (i32, i32, i32, i32) {
    %c0_i32 = arith.constant 0 : i32
    %c0_i32_0 = arith.constant 0 : i32
    %c0_i32_1 = arith.constant 0 : i32
    %c0_i32_2 = arith.constant 0 : i32
    return %arg0, %c0_i32, %c0_i32_0, %c0_i32_1 : i32, i32, i32, i32
  }
  func.func @transform_3(%arg0: i32) -> (i32, i32, i32, i32) {
    %c0_i32 = arith.constant 0 : i32
    %c0_i32_0 = arith.constant 0 : i32
    %c0_i32_1 = arith.constant 0 : i32
    %c0_i32_2 = arith.constant 0 : i32
    return %arg0, %c0_i32, %c0_i32_0, %c0_i32_1 : i32, i32, i32, i32
  }
  func.func @transform_4(%arg0: i32) -> (i32, i32, i32, i32) {
    %c0_i32 = arith.constant 0 : i32
    %c0_i32_0 = arith.constant 0 : i32
    %c0_i32_1 = arith.constant 0 : i32
    %c0_i32_2 = arith.constant 0 : i32
    %c0_i32_3 = arith.constant 0 : i32
    return %c0_i32, %c0_i32_0, %c0_i32_1, %c0_i32_2 : i32, i32, i32, i32
  }
  func.func @transform_5(%arg0: i32) -> (i32, i32) {
    %c0_i32 = arith.constant 0 : i32
    %c0_i32_0 = arith.constant 0 : i32
    %c0_i32_1 = arith.constant 0 : i32
    return %c0_i32, %c0_i32_0 : i32, i32
  }
  func.func @transform_6(%arg0: i32) -> (i32, i32, i32, i32) {
    %c0_i32 = arith.constant 0 : i32
    %c0_i32_0 = arith.constant 0 : i32
    %c0_i32_1 = arith.constant 0 : i32
    %c0_i32_2 = arith.constant 0 : i32
    %c0_i32_3 = arith.constant 0 : i32
    return %c0_i32, %c0_i32_0, %c0_i32_1, %c0_i32_2 : i32, i32, i32, i32
  }
  func.func @transform_7(%arg0: i32) -> (i32, i32) {
    %c0_i32 = arith.constant 0 : i32
    %c0_i32_0 = arith.constant 0 : i32
    %c0_i32_1 = arith.constant 0 : i32
    return %c0_i32, %c0_i32_0 : i32, i32
  }
  func.func @transform_8(%arg0: i32) -> (i32, i32, i32, i32) {
    %c0_i32 = arith.constant 0 : i32
    %c0_i32_0 = arith.constant 0 : i32
    %c0_i32_1 = arith.constant 0 : i32
    %c0_i32_2 = arith.constant 0 : i32
    %c0_i32_3 = arith.constant 0 : i32
    return %c0_i32, %c0_i32_0, %c0_i32_1, %c0_i32_2 : i32, i32, i32, i32
  }
  func.func @transform_9(%arg0: i32) -> (i32, i32) {
    %c0_i32 = arith.constant 0 : i32
    %c0_i32_0 = arith.constant 0 : i32
    %c0_i32_1 = arith.constant 0 : i32
    return %c0_i32, %c0_i32_0 : i32, i32
  }
  func.func @transform_10(%arg0: i32) -> (i32, i32) {
    %c0_i32 = arith.constant 0 : i32
    %c0_i32_0 = arith.constant 0 : i32
    %c0_i32_1 = arith.constant 0 : i32
    return %c0_i32, %c0_i32_0 : i32, i32
  }
  func.func @transform_11(%arg0: i32) -> (i32, i32) {
    %c0_i32 = arith.constant 0 : i32
    %c0_i32_0 = arith.constant 0 : i32
    %c0_i32_1 = arith.constant 0 : i32
    return %c0_i32, %c0_i32_0 : i32, i32
  }
  func.func @transform_12(%arg0: i32) -> (i32, i32, i32, i32) {
    %c0_i32 = arith.constant 0 : i32
    %c0_i32_0 = arith.constant 0 : i32
    %c0_i32_1 = arith.constant 0 : i32
    %c0_i32_2 = arith.constant 0 : i32
    return %arg0, %c0_i32, %c0_i32_0, %c0_i32_1 : i32, i32, i32, i32
  }
}

</mosaic_0001>

<bundles_post_ra>
// kernel: res_down_noemb.1
= control target key start
LH: loop header
LB: loop body
LE: loop exit
PB: predicated region body
PF: predicated region fallthrough
CT: control target
= control target key end

     0   :  { %s6212_s0 = inlined_call_operand.vmem [shape: f32[2,8,8,8], index: 0, kind: input, shape index: {}]   ;;  %s6213_s1 = inlined_call_operand.vmem [shape: f32[2,8,8,8], index: 1, kind: input, shape index: {}]   ;;  %s6214_s2 = inlined_call_operand.vmem [shape: f32[2,8,8,8], index: 2, kind: input, shape index: {}]   ;;  %s6215_s3 = inlined_call_operand.vmem [shape: f32[2,8,8,8], index: 3, kind: input, shape index: {}]   ;;  %s6216_s4 = inlined_call_operand.vmem [shape: bf16[3,3,8,8], index: 4, kind: input, shape index: {}]   ;;  %s6217_s5 = inlined_call_operand.vmem [shape: f32[1,8], index: 5, kind: input, shape index: {}]   ;;  %s6218_s6 = inlined_call_operand.vmem [shape: bf16[3,3,8,8], index: 6, kind: input, shape index: {}]   ;;  %s6219_s7 = inlined_call_operand.vmem [shape: f32[1,8], index: 7, kind: input, shape index: {}]   ;;  %s6220_s8 = inlined_call_operand.vmem [shape: bf16[3,3,8,8], index: 8, kind: input, shape index: {}]   ;;  %s6221_s9 = inlined_call_operand.vmem [shape: f32[1,8], index: 9, kind: input, shape index: {}]   ;;  %s6222_s10 = inlined_call_operand.vmem [shape: bf16[8,8], index: 10, kind: input, shape index: {}]   ;;  %s6223_s11 = inlined_call_operand.vmem [shape: f32[1,8], index: 11, kind: input, shape index: {}]   ;;  %s6224_s12 = inlined_call_operand.hbm [shape: f32[2,8,8,8], index: 12, kind: output, shape index: {}]  }
   0x1   :  { %6225 = sst [smem:[#allocation10_spill]] %s6212_s0 }
   0x2   :  { %17 = vsyncpa [#allocation8], 0 }
   0x3   :  { %19 = vsyncpa [#allocation8 + $0x1], 0  ;;  %s5209_s21 = smov 0   ;;  %s5211_s22 = smov 0  }
   0x4   :  { %s5213_s23 = smov 0   ;;  %s5215_s24 = smov 0  }
   0x5 LB: > { %s5230_s25 = sadd.s32 4294967295, %s5138_s24   ;;  %s3967_s26 = sadd.s32 4294967294, %s5138_s24   ;;  %s5138_s24 = sphi %s5215_s24, %s6232_s24   ;;  %s5134_s23 = sphi %s5213_s23, %s6231_s23   ;;  %s5130_s22 = sphi %s5211_s22, %s6230_s22   ;;  %s5126_s21 = sphi %s5209_s21, %s6229_s21  }
   0x6   : > { %s5234_s27 = sadd.s32 1, %s5138_s24   ;;  %s304_s28 = sadd.s32 1, %s5134_s23 }
   0x7   : > { %s301_s29 = ssub.s32 %s5138_s24, %s5234_s27  ;;  %p314_p0 = scmp.ne.s32.totalorder %s5134_s23, %s5130_s22 }
   0x8   : > { %p302_p1 = scmp.eq.s32.totalorder %s301_s29, 0  ;;  %p315_p2 = scmp.eq.s32.totalorder %s5230_s25, 1 }
   0x9   : > { %p320_p3 = scmp.ne.s32.totalorder %s5130_s22, %s5126_s21  ;;  %p321_p4 = scmp.eq.s32.totalorder %s3967_s26, 1 }
   0xa   : > { %s5245_s30 = scalar_select %p302_p1, %s5134_s23, %s304_s28  }
   0xb   : > { %p5247_p5 = por %p315_p2, %p314_p0  ;;  %p5251_p6 = por %p321_p4, %p320_p3 }
   0xc   : > { %p3970_p7 = scmp.ge.s32.totalorder %s5138_s24, 1  ;;  %p395_p8 = scmp.lt.s32.totalorder %s5138_s24, 3 }
   0xe   : > { %p396_p9 = pnand %p3970_p7, %p395_p8 }
   0xf   : > { %v4012_v0 = vld [vmem:[%s6216_s4 + $0x4] sm:$0xf] (!%p396_p9)  ;;  %vm899_vm0 = vcmask (!%p396_p9), 1043456   ;;  %v4036_v1 = vld [vmem:[%s6216_s4 + $0x14] sm:$0xf] (!%p396_p9)  ;;  %p452_p10 = scmp.lt.s32.totalorder (!%p396_p9), %s5230_s25, 1 }
  0x10   : > { %399 = sbr.rel (%p396_p9) target bundleno = 1168 (0x490), region = 68  ;;  %4814 = vmatprep.subr.msk.bf16.mxu1 (!%p396_p9), %vm899_vm0, %v4012_v0  ;;  %v901_v2 = vsel (!%p396_p9), %vm899_vm0, %v4012_v0, 0  ;;  %4819 = vmatprep.subr.msk.bf16.mxu0 (!%p396_p9), %vm899_vm0, %v4036_v1  ;;  %v1381_v3 = vsel (!%p396_p9), %vm899_vm0, %v4036_v1, 0  ;;  %vm473_vm1 = vcmask (!%p396_p9), 64512   ;;  %v5271_v4 = vld [vmem:[%s6216_s4] sm:$0xf] (!%p396_p9) }
  0x11   : > { %4319 = vmatpush3.bf16.msra.mxu1 (!%p396_p9), %v901_v2  ;;  %4369 = vmatpush3.bf16.msra.mxu0 (!%p396_p9), %v1381_v3  ;;  %vm475_vm2 = vcmask (!%p396_p9), 57344   ;;  %v5140_v5 = vmov (!%p396_p9), 0.0   ;;  %v5367_v6 = vld [vmem:[%s6216_s4 + $0x18] sm:$0xf] (!%p396_p9)  ;;  %s6228_s0 = sld [smem:[#allocation10_spill]] (!%p396_p9)  ;;  %vm548_vm3 = vcmask (!%p396_p9), 58368  }
  0x12   : > { %511 = vst.msk [vmem:[#allocation4] sm:$0xff] (!%p396_p9), %vm473_vm1, %v5140_v5  ;;  %513 = vst.msk [vmem:[#allocation4 + $0x10] sm:$0xff] (!%p396_p9), %vm473_vm1, %v5140_v5  ;;  %4815 = vmatprep.subr.msk.bf16.mxu1 (!%p396_p9), %vm899_vm0, %v5271_v4  ;;  %4820 = vmatprep.subr.msk.bf16.mxu0 (!%p396_p9), %vm899_vm0, %v5367_v6  ;;  %s449_s29 = sand.u32 (!%p396_p9), 1, %s5130_s22  }
  0x13   : > { %477 = vst.msk [vmem:[#allocation2 + $0x10] sm:$0xff] (!%p396_p9), %vm473_vm1, %v5140_v5  ;;  %479 = vst.msk [vmem:[#allocation2 + $0x20] sm:$0xff] (!%p396_p9), %vm473_vm1, %v5140_v5 }
  0x14   : > { %481 = vst.msk [vmem:[#allocation2 + $0x30] sm:$0xff] (!%p396_p9), %vm473_vm1, %v5140_v5  ;;  %483 = vst.msk [vmem:[#allocation2 + $0x40] sm:$0xff] (!%p396_p9), %vm473_vm1, %v5140_v5 }
  0x15   : > { %485 = vst.msk [vmem:[#allocation2 + $0x50] sm:$0xff] (!%p396_p9), %vm473_vm1, %v5140_v5  ;;  %487 = vst.msk [vmem:[#allocation2 + $0x60] sm:$0xff] (!%p396_p9), %vm473_vm1, %v5140_v5 }
  0x16   : > { %489 = vst.msk [vmem:[#allocation2 + $0x70] sm:$0xff] (!%p396_p9), %vm473_vm1, %v5140_v5  ;;  %491 = vst.msk [vmem:[#allocation2 + $0x80] sm:$0xff] (!%p396_p9), %vm473_vm1, %v5140_v5 }
  0x17   : > { %s5274_s26 = scalar_select %p452_p10, %s5230_s25, 1  ;;  %495 = vst.msk [vmem:[#allocation3 + $0x10] sm:$0xff] %vm473_vm1, %v5140_v5  ;;  %497 = vst.msk [vmem:[#allocation3 + $0x20] sm:$0xff] %vm473_vm1, %v5140_v5 }
  0x18   : > { %499 = vst.msk [vmem:[#allocation3 + $0x30] sm:$0xff] %vm473_vm1, %v5140_v5  ;;  %501 = vst.msk [vmem:[#allocation3 + $0x40] sm:$0xff] %vm473_vm1, %v5140_v5 }
  0x19   : > { %503 = vst.msk [vmem:[#allocation3 + $0x50] sm:$0xff] %vm473_vm1, %v5140_v5  ;;  %505 = vst.msk [vmem:[#allocation3 + $0x60] sm:$0xff] %vm473_vm1, %v5140_v5  ;;  %s5442_s15 = sshll.u32 %s5274_s26, 6 }
  0x1a   : > { %507 = vst.msk [vmem:[#allocation3 + $0x70] sm:$0xff] %vm473_vm1, %v5140_v5  ;;  %509 = vst.msk [vmem:[#allocation3 + $0x80] sm:$0xff] %vm473_vm1, %v5140_v5  ;;  %s5448_s18 = scalar_lea.vmem %s6214_s2, %s5442_s15  ;;  %s5457_s28 = scalar_lea.vmem %s6213_s1, %s5442_s15 }
  0x1b   : > { %515 = vst.msk [vmem:[#allocation4 + $0x20] sm:$0xff] %vm473_vm1, %v5140_v5  ;;  %517 = vst.msk [vmem:[#allocation4 + $0x30] sm:$0xff] %vm473_vm1, %v5140_v5  ;;  %v5451_v7 = vld [vmem:[%s5448_s18] sm:$0xff]  ;;  %v5460_v8 = vld [vmem:[%s5448_s18 + $0x8] sm:$0xff]  ;;  %s5512_s16 = scalar_lea.vmem %s6215_s3, %s5442_s15  ;;  %s5551_s20 = scalar_lea.vmem %s6228_s0, %s5442_s15 }
  0x1c   : > { %519 = vst.msk [vmem:[#allocation4 + $0x40] sm:$0xff] %vm473_vm1, %v5140_v5  ;;  %521 = vst.msk [vmem:[#allocation4 + $0x50] sm:$0xff] %vm473_vm1, %v5140_v5  ;;  %v5463_v9 = vld [vmem:[%s5448_s18 + $0x10] sm:$0xff]  ;;  %v3996_v10 = vmul.f32 -1.442695, %v5451_v7  ;;  %v5467_v11 = vld [vmem:[%s5457_s28] sm:$0xff] }
  0x1d   : > { %523 = vst.msk [vmem:[#allocation4 + $0x60] sm:$0xff] %vm473_vm1, %v5140_v5  ;;  %525 = vst.msk [vmem:[#allocation4 + $0x70] sm:$0xff] %vm473_vm1, %v5140_v5  ;;  %v5470_v12 = vld [vmem:[%s5457_s28 + $0x8] sm:$0xff]  ;;  %v3988_v13 = vmul.f32 -1.442695, %v5467_v11  ;;  %v5477_v17 = vld [vmem:[%s5457_s28 + $0x10] sm:$0xff] }
  0x1e   : > { %527 = vst.msk [vmem:[#allocation4 + $0x80] sm:$0xff] %vm473_vm1, %v5140_v5  ;;  %529 = vst.msk [vmem:[#allocation5] sm:$0xff] %vm473_vm1, %v5140_v5  ;;  %v3989_v14 = vmul.f32 -1.442695, %v5470_v12  ;;  %v3997_v15 = vmul.f32 -1.442695, %v5460_v8  ;;  %4884 = vpow2.f32 %v3996_v10 }
  0x1f   : > { %531 = vst.msk [vmem:[#allocation5 + $0x10] sm:$0xff] %vm473_vm1, %v5140_v5  ;;  %533 = vst.msk [vmem:[#allocation5 + $0x20] sm:$0xff] %vm473_vm1, %v5140_v5  ;;  %v3998_v16 = vmul.f32 -1.442695, %v5463_v9  ;;  %v5480_v18 = vld [vmem:[%s5457_s28 + $0x18] sm:$0xff]  ;;  %4886 = vpow2.f32 %v3988_v13  ;;  %v5487_v21 = vld [vmem:[%s5448_s18 + $0x20] sm:$0xff] }
  0x20   : > { %535 = vst.msk [vmem:[#allocation5 + $0x30] sm:$0xff] %vm473_vm1, %v5140_v5  ;;  %537 = vst.msk [vmem:[#allocation5 + $0x40] sm:$0xff] %vm473_vm1, %v5140_v5  ;;  %v5483_v19 = vld [vmem:[%s5448_s18 + $0x18] sm:$0xff]  ;;  %v3990_v20 = vmul.f32 -1.442695, %v5477_v17  ;;  %4888 = vpow2.f32 %v3989_v14  ;;  %v5491_v23 = vld [vmem:[%s5457_s28 + $0x20] sm:$0xff] }
  0x21   : > { %539 = vst.msk [vmem:[#allocation5 + $0x50] sm:$0xff] %vm473_vm1, %v5140_v5  ;;  %541 = vst.msk [vmem:[#allocation5 + $0x60] sm:$0xff] %vm473_vm1, %v5140_v5  ;;  %v3991_v22 = vmul.f32 -1.442695, %v5480_v18  ;;  %4890 = vpow2.f32 %v3997_v15  ;;  %v3999_v24 = vmul.f32 -1.442695, %v5483_v19 }
  0x22   : > { %543 = vst.msk [vmem:[#allocation5 + $0x70] sm:$0xff] %vm473_vm1, %v5140_v5  ;;  %545 = vst.msk [vmem:[#allocation5 + $0x80] sm:$0xff] %vm473_vm1, %v5140_v5  ;;  %v5495_v25 = vld [vmem:[%s5457_s28 + $0x28] sm:$0xff]  ;;  %4892 = vpow2.f32 %v3998_v16  ;;  %v4000_v26 = vmul.f32 -1.442695, %v5487_v21  ;;  %v5503_v29 = vld [vmem:[%s5448_s18 + $0x30] sm:$0xff] }
  0x23   : > { %547 = vst.msk [vmem:[#allocation6] sm:$0xff] %vm473_vm1, %v5140_v5  ;;  %550 = vst.msk [vmem:[#allocation6 + $0x10] sm:$0xff] %vm473_vm1, %v5140_v5  ;;  %v5499_v27 = vld [vmem:[%s5448_s18 + $0x28] sm:$0xff]  ;;  %4894 = vpow2.f32 %v3990_v20  ;;  %v3992_v28 = vmul.f32 -1.442695, %v5491_v23  ;;  %v5515_v52 = vld [vmem:[%s5457_s28 + $0x30] sm:$0xff] }
  0x24   : > { %552 = vst.msk [vmem:[#allocation6 + $0x20] sm:$0xff] %vm473_vm1, %v5140_v5  ;;  %554 = vst.msk [vmem:[#allocation6 + $0x30] sm:$0xff] %vm473_vm1, %v5140_v5  ;;  %4896 = vpow2.f32 %v3991_v22  ;;  %v3993_v30 = vmul.f32 -1.442695, %v5495_v25  ;;  %v4001_v31 = vmul.f32 -1.442695, %v5499_v27 }
  0x25   : > { %556 = vst.msk [vmem:[#allocation6 + $0x40] sm:$0xff] %vm473_vm1, %v5140_v5  ;;  %558 = vst.msk [vmem:[#allocation6 + $0x50] sm:$0xff] %vm473_vm1, %v5140_v5  ;;  %4898 = vpow2.f32 %v3999_v24  ;;  %v4002_v32 = vmul.f32 -1.442695, %v5503_v29  ;;  %v5518_v55 = vld [vmem:[%s5457_s28 + $0x38] sm:$0xff]  ;;  %v5521_v58 = vld [vmem:[%s5512_s16] sm:$0xff] }
  0x26   : > { %560 = vst.msk [vmem:[#allocation6 + $0x60] sm:$0xff] %vm473_vm1, %v5140_v5  ;;  %562 = vst.msk [vmem:[#allocation6 + $0x70] sm:$0xff] %vm473_vm1, %v5140_v5  ;;  %4900 = vpow2.f32 %v4000_v26  ;;  %v3994_v61 = vmul.f32 -1.442695, %v5515_v52  ;;  %v5525_v62 = vld [vmem:[%s5512_s16 + $0x8] sm:$0xff]  ;;  %v5529_v2 = vld [vmem:[%s5512_s16 + $0x10] sm:$0xff] }
  0x27   : > { %564 = vst.msk [vmem:[#allocation6 + $0x80] sm:$0xff] %vm473_vm1, %v5140_v5  ;;  %566 = vst.msk [vmem:[#allocation6 + $0x90] sm:$0xff] %vm473_vm1, %v5140_v5  ;;  %4902 = vpow2.f32 %v3992_v28  ;;  %v3995_v1 = vmul.f32 -1.442695, %v5518_v55  ;;  %v4004_v13 = vmul.f32 -1.442695, %v5521_v58 }
  0x28   : > { %512 = vst.msk [vmem:[#allocation4 + $0x8] sm:$0x1] %vm475_vm2, %v5140_v5  ;;  %514 = vst.msk [vmem:[#allocation4 + $0x18] sm:$0x1] %vm475_vm2, %v5140_v5  ;;  %v4885_v33 = vpop.eup %4884  ;;  %4904 = vpow2.f32 %v3993_v30  ;;  %v5534_v14 = vld [vmem:[%s5512_s16 + $0x18] sm:$0xff]  ;;  %v5539_v22 = vld [vmem:[%s5512_s16 + $0x20] sm:$0xff] }
  0x29   : > { %478 = vst.msk [vmem:[#allocation2 + $0x18] sm:$0x1] %vm475_vm2, %v5140_v5  ;;  %480 = vst.msk [vmem:[#allocation2 + $0x28] sm:$0x1] %vm475_vm2, %v5140_v5  ;;  %v4887_v34 = vpop.eup %4886  ;;  %v746_v35 = vadd.f32 1.0, %v4885_v33  ;;  %4906 = vpow2.f32 %v4001_v31  ;;  %v5545_v28 = vld [vmem:[%s5512_s16 + $0x28] sm:$0xff] }
  0x2a   : > { %482 = vst.msk [vmem:[#allocation2 + $0x38] sm:$0x1] %vm475_vm2, %v5140_v5  ;;  %484 = vst.msk [vmem:[#allocation2 + $0x48] sm:$0x1] %vm475_vm2, %v5140_v5  ;;  %v4889_v36 = vpop.eup %4888  ;;  %v673_v37 = vadd.f32 1.0, %v4887_v34  ;;  %4908 = vpow2.f32 %v4002_v32  ;;  %v5557_v31 = vld [vmem:[%s5512_s16 + $0x30] sm:$0xff] }
  0x2b   : > { %486 = vst.msk [vmem:[#allocation2 + $0x58] sm:$0x1] %vm475_vm2, %v5140_v5  ;;  %488 = vst.msk [vmem:[#allocation2 + $0x68] sm:$0x1] %vm475_vm2, %v5140_v5  ;;  %v4891_v38 = vpop.eup %4890  ;;  %4910 = vrcp.f32 %v746_v35  ;;  %v674_v39 = vadd.f32 1.0, %v4889_v36  ;;  %v5563_v35 = vld [vmem:[%s5512_s16 + $0x38] sm:$0xff] }
  0x2c   : > { %490 = vst.msk [vmem:[#allocation2 + $0x78] sm:$0x1] %vm475_vm2, %v5140_v5  ;;  %492 = vst.msk [vmem:[#allocation2 + $0x88] sm:$0x1] %vm475_vm2, %v5140_v5  ;;  %v4893_v40 = vpop.eup %4892  ;;  %4912 = vrcp.f32 %v673_v37  ;;  %v747_v41 = vadd.f32 1.0, %v4891_v38  ;;  %v5569_v38 = vld [vmem:[%s5448_s18 + $0x38] sm:$0xff] }
  0x2d   : > { %496 = vst.msk [vmem:[#allocation3 + $0x18] sm:$0x1] %vm475_vm2, %v5140_v5  ;;  %498 = vst.msk [vmem:[#allocation3 + $0x28] sm:$0x1] %vm475_vm2, %v5140_v5  ;;  %v4895_v42 = vpop.eup %4894  ;;  %4914 = vrcp.f32 %v674_v39  ;;  %v748_v43 = vadd.f32 1.0, %v4893_v40  ;;  %s3971_s18 = sshll.u32 %s449_s29, 6 }
  0x2e   : > { %500 = vst.msk [vmem:[#allocation3 + $0x38] sm:$0x1] %vm475_vm2, %v5140_v5  ;;  %502 = vst.msk [vmem:[#allocation3 + $0x48] sm:$0x1] %vm475_vm2, %v5140_v5  ;;  %v4897_v44 = vpop.eup %4896  ;;  %4916 = vrcp.f32 %v747_v41  ;;  %v675_v45 = vadd.f32 1.0, %v4895_v42  ;;  %v5575_v41 = vld [vmem:[%s5551_s20] sm:$0xff] }
  0x2f   : > { %504 = vst.msk [vmem:[#allocation3 + $0x58] sm:$0x1] %vm475_vm2, %v5140_v5  ;;  %506 = vst.msk [vmem:[#allocation3 + $0x68] sm:$0x1] %vm475_vm2, %v5140_v5  ;;  %v4899_v46 = vpop.eup %4898  ;;  %4918 = vrcp.f32 %v748_v43  ;;  %v676_v47 = vadd.f32 1.0, %v4897_v44  ;;  %v873_v43 = vld [vmem:[#allocation4 + $0x1] sm:$0xff] }
  0x30   : > { %508 = vst.msk [vmem:[#allocation3 + $0x78] sm:$0x1] %vm475_vm2, %v5140_v5  ;;  %510 = vst.msk [vmem:[#allocation3 + $0x88] sm:$0x1] %vm475_vm2, %v5140_v5  ;;  %v4901_v48 = vpop.eup %4900  ;;  %4920 = vrcp.f32 %v675_v45  ;;  %v749_v49 = vadd.f32 1.0, %v4899_v46  ;;  %v5581_v45 = vld [vmem:[%s5551_s20 + $0x8] sm:$0xff] }
  0x31   : > { %516 = vst.msk [vmem:[#allocation4 + $0x28] sm:$0x1] %vm475_vm2, %v5140_v5  ;;  %518 = vst.msk [vmem:[#allocation4 + $0x38] sm:$0x1] %vm475_vm2, %v5140_v5  ;;  %v4903_v50 = vpop.eup %4902  ;;  %4922 = vrcp.f32 %v676_v47  ;;  %v750_v51 = vadd.f32 1.0, %v4901_v48  ;;  %s4177_s28 = sshll.u32 %s5230_s25, 10 }
  0x32   : > { %520 = vst.msk [vmem:[#allocation4 + $0x48] sm:$0x1] %vm475_vm2, %v5140_v5  ;;  %522 = vst.msk [vmem:[#allocation4 + $0x58] sm:$0x1] %vm475_vm2, %v5140_v5  ;;  %v4905_v53 = vpop.eup %4904  ;;  %4924 = vrcp.f32 %v749_v49  ;;  %v677_v54 = vadd.f32 1.0, %v4903_v50  ;;  %s6162_s19 = scalar_lea.hbm %s6224_s12, %s4177_s28  ;;  %s6171_s25 = scalar_lea.sflag [#allocation8], %s449_s29 }
  0x33   : > { %524 = vst.msk [vmem:[#allocation4 + $0x68] sm:$0x1] %vm475_vm2, %v5140_v5  ;;  %526 = vst.msk [vmem:[#allocation4 + $0x78] sm:$0x1] %vm475_vm2, %v5140_v5  ;;  %v4907_v56 = vpop.eup %4906  ;;  %4926 = vrcp.f32 %v750_v51  ;;  %v678_v57 = vadd.f32 1.0, %v4905_v53 }
  0x34   : > { %528 = vst.msk [vmem:[#allocation4 + $0x88] sm:$0x1] %vm475_vm2, %v5140_v5  ;;  %530 = vst.msk [vmem:[#allocation5 + $0x8] sm:$0x1] %vm475_vm2, %v5140_v5  ;;  %v4909_v59 = vpop.eup %4908  ;;  %4928 = vrcp.f32 %v677_v54  ;;  %v751_v60 = vadd.f32 1.0, %v4907_v56 }
  0x35   : > { %532 = vst.msk [vmem:[#allocation5 + $0x18] sm:$0x1] %vm475_vm2, %v5140_v5  ;;  %534 = vst.msk [vmem:[#allocation5 + $0x28] sm:$0x1] %vm475_vm2, %v5140_v5  ;;  %v4911_v63 = vpop.eup %4910  ;;  %4930 = vrcp.f32 %v678_v57  ;;  %v752_v0 = vadd.f32 1.0, %v4909_v59 }
  0x36   : > { %536 = vst.msk [vmem:[#allocation5 + $0x38] sm:$0x1] %vm475_vm2, %v5140_v5  ;;  %538 = vst.msk [vmem:[#allocation5 + $0x48] sm:$0x1] %vm475_vm2, %v5140_v5  ;;  %v4913_v3 = vpop.eup %4912  ;;  %v770_v10 = vmul.f32 %v4911_v63, %v5451_v7  ;;  %4932 = vrcp.f32 %v751_v60  ;;  %v4005_v20 = vmul.f32 -1.442695, %v5525_v62 }
  0x37   : > { %540 = vst.msk [vmem:[#allocation5 + $0x58] sm:$0x1] %vm475_vm2, %v5140_v5  ;;  %542 = vst.msk [vmem:[#allocation5 + $0x68] sm:$0x1] %vm475_vm2, %v5140_v5  ;;  %v4915_v15 = vpop.eup %4914  ;;  %v697_v16 = vmul.f32 %v4913_v3, %v5467_v11  ;;  %4934 = vrcp.f32 %v752_v0  ;;  %v4006_v26 = vmul.f32 -1.442695, %v5529_v2 }
  0x38   : > { %544 = vst.msk [vmem:[#allocation5 + $0x78] sm:$0x1] %vm475_vm2, %v5140_v5  ;;  %546 = vst.msk [vmem:[#allocation5 + $0x88] sm:$0x1] %vm475_vm2, %v5140_v5  ;;  %v4917_v24 = vpop.eup %4916  ;;  %v698_v7 = vmul.f32 %v4915_v15, %v5470_v12  ;;  %4936 = vpow2.f32 %v3994_v61  ;;  %v4007_v12 = vmul.f32 -1.442695, %v5534_v14 }
  0x39   : > { %779 = vst.msk [vmem:[#allocation4 + $0x11] sm:$0xff] %vm473_vm1, %v770_v10  ;;  %v4919_v30 = vpop.eup %4918  ;;  %706 = vst.msk [vmem:[#allocation3 + $0x11] sm:$0xff] %vm473_vm1, %v697_v16  ;;  %v771_v11 = vmul.f32 %v4917_v24, %v5460_v8  ;;  %4938 = vpow2.f32 %v3995_v1  ;;  %v4008_v34 = vmul.f32 -1.442695, %v5539_v22  ;;  %v4009_v37 = vmul.f32 -1.442695, %v5545_v28 }
  0x3a   : > { %v4921_v32 = vpop.eup %4920  ;;  %707 = vst.msk [vmem:[#allocation3 + $0x21] sm:$0xff] %vm473_vm1, %v698_v7  ;;  %v772_v33 = vmul.f32 %v4919_v30, %v5463_v9  ;;  %4940 = vpow2.f32 %v4004_v13  ;;  %v4010_v40 = vmul.f32 -1.442695, %v5557_v31  ;;  %v4011_v44 = vmul.f32 -1.442695, %v5563_v35 }
  0x3b   : > { %v4923_v36 = vpop.eup %4922  ;;  %780 = vst.msk [vmem:[#allocation4 + $0x21] sm:$0xff] %vm473_vm1, %v771_v11  ;;  %v699_v8 = vmul.f32 %v4921_v32, %v5477_v17  ;;  %4942 = vpow2.f32 %v4005_v20  ;;  %v4003_v47 = vmul.f32 -1.442695, %v5569_v38  ;;  %v3980_v50 = vmul.f32 -1.442695, %v5575_v41 }
  0x3c   : > { %v4925_v39 = vpop.eup %4924  ;;  %781 = vst.msk [vmem:[#allocation4 + $0x31] sm:$0xff] %vm473_vm1, %v772_v33  ;;  %v700_v9 = vmul.f32 %v4923_v36, %v5480_v18  ;;  %4944 = vpow2.f32 %v4006_v26  ;;  %v3981_v56 = vmul.f32 -1.442695, %v5581_v45  ;;  %v981_v13 = vsel %vm899_vm0, %v5271_v4, 0  ;;  %v5614_v7 = vld [vmem:[%s6216_s4 + $0x8] sm:$0xf] }
  0x3d   : > { %v4927_v42 = vpop.eup %4926  ;;  %708 = vst.msk [vmem:[#allocation3 + $0x31] sm:$0xff] %vm473_vm1, %v699_v8  ;;  %v773_v17 = vmul.f32 %v4925_v39, %v5483_v19  ;;  %4946 = vpow2.f32 %v4007_v12  ;;  %v1483_v4 = vsel %vm899_vm0, %v5367_v6, 0  ;;  %v5626_v36 = vld [vmem:[%s6216_s4 + $0x1c] sm:$0xf] }
  0x3e   : > { %v4929_v46 = vpop.eup %4928  ;;  %709 = vst.msk [vmem:[#allocation3 + $0x41] sm:$0xff] %vm473_vm1, %v700_v9  ;;  %v774_v18 = vmul.f32 %v4927_v42, %v5487_v21  ;;  %4948 = vpow2.f32 %v4008_v34 }
  0x3f   : > { %v4931_v48 = vpop.eup %4930  ;;  %782 = vst.msk [vmem:[#allocation4 + $0x41] sm:$0xff] %vm473_vm1, %v773_v17  ;;  %v701_v19 = vmul.f32 %v4929_v46, %v5491_v23  ;;  %4950 = vpow2.f32 %v4009_v37 }
  0x40   : > { %v5586_v49 = vld [vmem:[#allocation4 + $0x11] sm:$0xff]  ;;  %v4933_v51 = vpop.eup %4932  ;;  %v1354_v54 = vld [vmem:[#allocation3 + $0x11] sm:$0xff]  ;;  %783 = vst.msk [vmem:[#allocation4 + $0x51] sm:$0xff] %vm473_vm1, %v774_v18  ;;  %v702_v21 = vmul.f32 %v4931_v48, %v5495_v25  ;;  %4952 = vpow2.f32 %v4010_v40 }
  0x41   : > { %v881_v53 = vpack.c.bf16 %v5586_v49, %v873_v43  ;;  %v4935_v57 = vpop.eup %4934  ;;  %v1355_v59 = vld [vmem:[#allocation3 + $0x21] sm:$0xff]  ;;  %710 = vst.msk [vmem:[#allocation3 + $0x51] sm:$0xff] %vm473_vm1, %v701_v19  ;;  %v775_v23 = vmul.f32 %v4933_v51, %v5499_v27  ;;  %4954 = vpow2.f32 %v4011_v44 }
  0x42   : > { %v4937_v60 = vpop.eup %4936  ;;  %v1362_v61 = vpack.c.bf16 %v1355_v59, %v1354_v54  ;;  %v5598_v63 = vld [vmem:[#allocation4 + $0x21] sm:$0xff]  ;;  %711 = vst.msk [vmem:[#allocation3 + $0x61] sm:$0xff] %vm473_vm1, %v702_v21  ;;  %v776_v25 = vmul.f32 %v4935_v57, %v5503_v29  ;;  %4956 = vpow2.f32 %v4003_v47  ;;  %v5641_v19 = vld [vmem:[%s5551_s20 + $0x10] sm:$0xff]  ;;  %v5647_v54 = vld [vmem:[%s5551_s20 + $0x18] sm:$0xff] }
  0x43   : > { %4320 = vmatprep.mubr.msk.bf16.mxu1 %vm473_vm1, %v881_v53  ;;  %v4939_v0 = vpop.eup %4938  ;;  %v5602_v1 = vld [vmem:[#allocation4 + $0x31] sm:$0xff]  ;;  %784 = vst.msk [vmem:[#allocation4 + $0x61] sm:$0xff] %vm473_vm1, %v775_v23  ;;  %v679_v3 = vadd.f32 1.0, %v4937_v60  ;;  %4958 = vpow2.f32 %v3980_v50  ;;  %v5650_v57 = vld [vmem:[%s5551_s20 + $0x20] sm:$0xff]  ;;  %v3982_v60 = vmul.f32 -1.442695, %v5641_v19 }
  0x44   : > { %v4941_v27 = vpop.eup %4940  ;;  %4370 = vmatprep.mubr.msk.bf16.mxu0 %vm473_vm1, %v1362_v61  ;;  %v882_v10 = vpack.c.bf16 %v5602_v1, %v5598_v63  ;;  %v1356_v15 = vld [vmem:[#allocation3 + $0x31] sm:$0xff]  ;;  %785 = vst.msk [vmem:[#allocation4 + $0x71] sm:$0xff] %vm473_vm1, %v776_v25  ;;  %v680_v29 = vadd.f32 1.0, %v4939_v0  ;;  %4960 = vpow2.f32 %v3981_v56 }
  0x45   : > { %v4943_v16 = vpop.eup %4942  ;;  %v1357_v20 = vld [vmem:[#allocation3 + $0x41] sm:$0xff]  ;;  %4962 = vrcp.f32 %v679_v3  ;;  %v819_v24 = vadd.f32 1.0, %v4941_v27  ;;  %v5655_v61 = vld [vmem:[%s5551_s20 + $0x28] sm:$0xff]  ;;  %v3983_v3 = vmul.f32 -1.442695, %v5647_v54 }
  0x46   : > { %v4945_v26 = vpop.eup %4944  ;;  %4321 = vmatmul.mubr.msk.bf16.vlgmr.msra.gmra.mrb[0].mxu1 %vm473_vm1, %v882_v10  ;;  %v1363_v30 = vpack.c.bf16 %v1357_v20, %v1356_v15  ;;  %v5617_v11 = vld [vmem:[#allocation4 + $0x41] sm:$0xff]  ;;  %4964 = vrcp.f32 %v680_v29  ;;  %v820_v12 = vadd.f32 1.0, %v4943_v16  ;;  %v5659_v27 = vld [vmem:[%s5551_s20 + $0x30] sm:$0xff]  ;;  %v3984_v15 = vmul.f32 -1.442695, %v5650_v57  ;;  %v5664_v29 = vld [vmem:[%s5551_s20 + $0x38] sm:$0xff] }
  0x47   : > { %v4947_v32 = vpop.eup %4946  ;;  %4329 = vmatpush3.bf16.msra.mxu1 %v981_v13  ;;  %v5621_v33 = vld [vmem:[#allocation4 + $0x51] sm:$0xff]  ;;  %4966 = vrcp.f32 %v819_v24  ;;  %v821_v34 = vadd.f32 1.0, %v4945_v26  ;;  %v3985_v24 = vmul.f32 -1.442695, %v5655_v61  ;;  %555 = vst.msk [vmem:[#allocation6 + $0x38] sm:$0x3] %vm548_vm3, %v5140_v5 }
  0x48   : > { %v4949_v8 = vpop.eup %4948  ;;  %4371 = vmatmul.mubr.msk.bf16.vlgmr.msra.gmra.mrb[0].mxu0 %vm473_vm1, %v1363_v30  ;;  %v883_v37 = vpack.c.bf16 %v5621_v33, %v5617_v11  ;;  %v1358_v39 = vld [vmem:[#allocation3 + $0x51] sm:$0xff]  ;;  %4816 = vmatprep.subr.msk.bf16.mxu1 %vm899_vm0, %v5614_v7  ;;  %4968 = vrcp.f32 %v820_v12  ;;  %v822_v6 = vadd.f32 1.0, %v4947_v32  ;;  %v3987_v32 = vmul.f32 -1.442695, %v5664_v29  ;;  %549 = vst.msk [vmem:[#allocation6 + $0x8] sm:$0x3] %vm548_vm3, %v5140_v5 }
  0x49   : > { %v4951_v9 = vpop.eup %4950  ;;  %v1359_v40 = vld [vmem:[#allocation3 + $0x61] sm:$0xff]  ;;  %4379 = vmatpush3.bf16.msra.mxu0 %v1483_v4  ;;  %4970 = vrcp.f32 %v821_v34  ;;  %v823_v42 = vadd.f32 1.0, %v4949_v8  ;;  %v3986_v4 = vmul.f32 -1.442695, %v5659_v27  ;;  %551 = vst.msk [vmem:[#allocation6 + $0x18] sm:$0x3] %vm548_vm3, %v5140_v5 }
  0x4a   : > { %v4953_v43 = vpop.eup %4952  ;;  %4324 = vmatprep.mubr.msk.bf16.mxu1 %vm473_vm1, %v883_v37  ;;  %v1364_v17 = vpack.c.bf16 %v1359_v40, %v1358_v39  ;;  %v5634_v44 = vld [vmem:[#allocation4 + $0x61] sm:$0xff]  ;;  %4972 = vrcp.f32 %v822_v6  ;;  %v824_v46 = vadd.f32 1.0, %v4951_v9  ;;  %4821 = vmatprep.subr.msk.bf16.mxu0 %vm899_vm0, %v5626_v36  ;;  %553 = vst.msk [vmem:[#allocation6 + $0x28] sm:$0x3] %vm548_vm3, %v5140_v5  ;;  %557 = vst.msk [vmem:[#allocation6 + $0x48] sm:$0x3] %vm548_vm3, %v5140_v5 }
  0x4b   : > { %v4955_v18 = vpop.eup %4954  ;;  %v5638_v47 = vld [vmem:[#allocation4 + $0x71] sm:$0xff]  ;;  %4974 = vrcp.f32 %v823_v42  ;;  %v825_v48 = vadd.f32 1.0, %v4953_v43  ;;  %559 = vst.msk [vmem:[#allocation6 + $0x58] sm:$0x3] %vm548_vm3, %v5140_v5  ;;  %561 = vst.msk [vmem:[#allocation6 + $0x68] sm:$0x3] %vm548_vm3, %v5140_v5 }
  0x4c   : > { %v4957_v50 = vpop.eup %4956  ;;  %4374 = vmatprep.mubr.msk.bf16.mxu0 %vm473_vm1, %v1364_v17  ;;  %v884_v51 = vpack.c.bf16 %v5638_v47, %v5634_v44  ;;  %4976 = vrcp.f32 %v824_v46  ;;  %v826_v53 = vadd.f32 1.0, %v4955_v18  ;;  %v860_v42 = vld [vmem:[#allocation5] sm:$0xff]  ;;  %563 = vst.msk [vmem:[#allocation6 + $0x78] sm:$0x3] %vm548_vm3, %v5140_v5  ;;  %565 = vst.msk [vmem:[#allocation6 + $0x88] sm:$0x3] %vm548_vm3, %v5140_v5 }
  0x4d   : > { %v4959_v21 = vpop.eup %4958  ;;  %4978 = vrcp.f32 %v825_v48  ;;  %v753_v56 = vadd.f32 1.0, %v4957_v50  ;;  %567 = vst.msk [vmem:[#allocation6 + $0x98] sm:$0x3] %vm548_vm3, %v5140_v5 }
  0x4e   : > { %v4961_v59 = vpop.eup %4960  ;;  %4325 = vmatmul.mubr.msk.bf16.gmra.mrb[4].mxu1 %vm473_vm1, %v884_v51  ;;  %4980 = vrcp.f32 %v826_v53  ;;  %v600_v23 = vadd.f32 1.0, %v4959_v21 }
  0x4f   : > { %v4963_v25 = vpop.eup %4962  ;;  %4982 = vrcp.f32 %v753_v56  ;;  %v601_v0 = vadd.f32 1.0, %v4961_v59 }
  0x50   : > { %v4965_v10 = vpop.eup %4964  ;;  %v703_v13 = vmul.f32 %v4963_v25, %v5515_v52  ;;  %4984 = vrcp.f32 %v600_v23 }
  0x51   : > { %v4967_v16 = vpop.eup %4966  ;;  %v704_v20 = vmul.f32 %v4965_v10, %v5518_v55  ;;  %4986 = vrcp.f32 %v601_v0  ;;  %v4026_v10 = vld [vmem:[%s6216_s4 + $0xc] sm:$0xf] }
  0x52   : > { %v4969_v26 = vpop.eup %4968  ;;  %712 = vst.msk [vmem:[#allocation3 + $0x71] sm:$0xff] %vm473_vm1, %v703_v13  ;;  %v843_v30 = vmul.f32 %v4967_v16, %v5521_v58  ;;  %4988 = vpow2.f32 %v3982_v60 }
  0x53   : > { %v4971_v52 = vpop.eup %4970  ;;  %713 = vst.msk [vmem:[#allocation3 + $0x81] sm:$0xff] %vm473_vm1, %v704_v20  ;;  %v844_v12 = vmul.f32 %v4969_v26, %v5525_v62  ;;  %4990 = vpow2.f32 %v3983_v3 }
  0x54   : > { %v4973_v55 = vpop.eup %4972  ;;  %852 = vst.msk [vmem:[#allocation5 + $0x11] sm:$0xff] %vm473_vm1, %v843_v30  ;;  %v845_v34 = vmul.f32 %v4971_v52, %v5529_v2  ;;  %4992 = vpow2.f32 %v3984_v15 }
  0x55   : > { %v4975_v8 = vpop.eup %4974  ;;  %853 = vst.msk [vmem:[#allocation5 + $0x21] sm:$0xff] %vm473_vm1, %v844_v12  ;;  %v846_v58 = vmul.f32 %v4973_v55, %v5534_v14  ;;  %4994 = vpow2.f32 %v3985_v24  ;;  %v1048_v12 = vld [vmem:[#allocation5 + $0x1] sm:$0xff] }
  0x56   : > { %v4977_v37 = vpop.eup %4976  ;;  %854 = vst.msk [vmem:[#allocation5 + $0x31] sm:$0xff] %vm473_vm1, %v845_v34  ;;  %v847_v62 = vmul.f32 %v4975_v8, %v5539_v22  ;;  %4996 = vpow2.f32 %v3986_v4  ;;  %v1585_v34 = vsel %vm899_vm0, %v5626_v36, 0 }
  0x57   : > { %v4979_v39 = vpop.eup %4978  ;;  %855 = vst.msk [vmem:[#allocation5 + $0x41] sm:$0xff] %vm473_vm1, %v846_v58  ;;  %v848_v6 = vmul.f32 %v4977_v37, %v5545_v28  ;;  %4998 = vpow2.f32 %v3987_v32  ;;  %v4051_v58 = vld [vmem:[%s6216_s4 + $0x20] sm:$0xf] }
  0x58   : > { %v4981_v2 = vpop.eup %4980  ;;  %856 = vst.msk [vmem:[#allocation5 + $0x51] sm:$0xff] %vm473_vm1, %v847_v62  ;;  %v849_v9 = vmul.f32 %v4979_v39, %v5557_v31 }
  0x59   : > { %v4983_v40 = vpop.eup %4982  ;;  %v1360_v14 = vld [vmem:[#allocation3 + $0x71] sm:$0xff]  ;;  %857 = vst.msk [vmem:[#allocation5 + $0x61] sm:$0xff] %vm473_vm1, %v848_v6  ;;  %v850_v43 = vmul.f32 %v4981_v2, %v5563_v35 }
  0x5a   : > { %v4985_v22 = vpop.eup %4984  ;;  %v1361_v17 = vld [vmem:[#allocation3 + $0x81] sm:$0xff]  ;;  %858 = vst.msk [vmem:[#allocation5 + $0x71] sm:$0xff] %vm473_vm1, %v849_v9  ;;  %v777_v46 = vmul.f32 %v4983_v40, %v5569_v38  ;;  %v1566_v40 = vpack.c.bf16 %v5598_v63, %v5586_v49 }
  0x5b   : > { %v4987_v28 = vpop.eup %4986  ;;  %v1365_v18 = vpack.c.bf16 %v1361_v17, %v1360_v14  ;;  %v861_v48 = vld [vmem:[#allocation5 + $0x10] sm:$0xff]  ;;  %859 = vst.msk [vmem:[#allocation5 + $0x81] sm:$0xff] %vm473_vm1, %v850_v43  ;;  %v624_v31 = vmul.f32 %v4985_v22, %v5575_v41  ;;  %v1075_v41 = vsel %vm899_vm0, %v5614_v7, 0 }
  0x5c   : > { %v4989_v50 = vpop.eup %4988  ;;  %v868_v51 = vpack.c.bf16 %v861_v48, %v860_v42  ;;  %v1457_v53 = vld [vmem:[#allocation5 + $0x20] sm:$0xff]  ;;  %786 = vst.msk [vmem:[#allocation4 + $0x81] sm:$0xff] %vm473_vm1, %v777_v46  ;;  %v625_v35 = vmul.f32 %v4987_v28, %v5581_v45  ;;  %v5704_v32 = vld [vmem:[#allocation5 + $0x11] sm:$0xff] }
  0x5d   : > { %v4991_v21 = vpop.eup %4990  ;;  %4375 = vmatmul.mubr.msk.bf16.gmra.mrb[4].mxu0 %vm473_vm1, %v1365_v18  ;;  %v1464_v56 = vpack.c.bf16 %v1457_v53, %v861_v48  ;;  %v863_v59 = vld [vmem:[#allocation5 + $0x30] sm:$0xff]  ;;  %633 = vst.msk [vmem:[#allocation2 + $0x11] sm:$0xff] %vm473_vm1, %v624_v31  ;;  %v602_v38 = vadd.f32 1.0, %v4989_v50  ;;  %v1056_v37 = vpack.c.bf16 %v5704_v32, %v1048_v12  ;;  %v1050_v6 = vld [vmem:[#allocation5 + $0x21] sm:$0xff] }
  0x5e   : > { %v4993_v23 = vpop.eup %4992  ;;  %4330 = vmatprep.mubr.msk.bf16.mxu1 %vm473_vm1, %v868_v51  ;;  %v869_v60 = vpack.c.bf16 %v863_v59, %v1457_v53  ;;  %v1459_v25 = vld [vmem:[#allocation5 + $0x40] sm:$0xff]  ;;  %634 = vst.msk [vmem:[#allocation2 + $0x21] sm:$0xff] %vm473_vm1, %v625_v35  ;;  %v603_v0 = vadd.f32 1.0, %v4991_v21  ;;  %v5718_v2 = vld [vmem:[#allocation5 + $0x31] sm:$0xff]  ;;  %v1568_v53 = vpack.c.bf16 %v5634_v44, %v5621_v33 }
  0x5f   : > { %v4995_v45 = vpop.eup %4994  ;;  %4380 = vmatprep.mubr.msk.bf16.mxu0 %vm473_vm1, %v1464_v56  ;;  %v865_v3 = vld [vmem:[#allocation5 + $0x50] sm:$0xff]  ;;  %5000 = vrcp.f32 %v602_v38  ;;  %v604_v13 = vadd.f32 1.0, %v4993_v23  ;;  %v1465_v26 = vpack.c.bf16 %v1459_v25, %v863_v59  ;;  %v5722_v14 = vld [vmem:[#allocation5 + $0x41] sm:$0xff]  ;;  %v1057_v28 = vpack.c.bf16 %v5718_v2, %v1050_v6 }
  0x60   : > { %v4997_v15 = vpop.eup %4996  ;;  %4331 = vmatmul.mubr.msk.bf16.vlgmr.msra.gmra.mrb[0].mxu1 %vm473_vm1, %v869_v60  ;;  %v870_v16 = vpack.c.bf16 %v865_v3, %v1459_v25  ;;  %v1461_v20 = vld [vmem:[#allocation5 + $0x60] sm:$0xff]  ;;  %5002 = vrcp.f32 %v603_v0  ;;  %v605_v7 = vadd.f32 1.0, %v4995_v45  ;;  %v5724_v42 = vld [vmem:[#allocation5 + $0x51] sm:$0xff]  ;;  %v1668_v38 = vpack.c.bf16 %v1050_v6, %v5704_v32 }
  0x61   : > { %v4999_v24 = vpop.eup %4998  ;;  %4339 = vmatpush3.bf16.msra.mxu1 %v1075_v41  ;;  %v867_v30 = vld [vmem:[#allocation5 + $0x70] sm:$0xff]  ;;  %5004 = vrcp.f32 %v604_v13  ;;  %v606_v4 = vadd.f32 1.0, %v4997_v15  ;;  %v1466_v52 = vpack.c.bf16 %v1461_v20, %v865_v3  ;;  %v1058_v49 = vpack.c.bf16 %v5724_v42, %v5722_v14  ;;  %v1054_v51 = vld [vmem:[#allocation5 + $0x61] sm:$0xff] }
  0x62   : > { %4334 = vmatprep.mubr.msk.bf16.mxu1 %vm473_vm1, %v870_v16  ;;  %4817 = vmatprep.subr.msk.bf16.mxu1 %vm899_vm0, %v4026_v10  ;;  %5006 = vrcp.f32 %v605_v7  ;;  %v607_v55 = vadd.f32 1.0, %v4999_v24  ;;  %v871_v8 = vpack.c.bf16 %v867_v30, %v1461_v20  ;;  %v1463_v62 = vld [vmem:[#allocation5 + $0x80] sm:$0xff]  ;;  %v1150_v35 = vld [vmem:[#allocation3 + $0x10] sm:$0xff] }
  0x63   : > { %5008 = vrcp.f32 %v606_v4  ;;  %v1467_v39 = vpack.c.bf16 %v1463_v62, %v867_v30  ;;  %v1151_v21 = vld [vmem:[#allocation3 + $0x20] sm:$0xff]  ;;  %v1152_v33 = vld [vmem:[#allocation3 + $0x30] sm:$0xff] }
  0x64   : > { %5010 = vrcp.f32 %v607_v55  ;;  %v1158_v59 = vpack.c.bf16 %v1151_v21, %v1150_v35  ;;  %v1153_v44 = vld [vmem:[#allocation3 + $0x40] sm:$0xff]  ;;  %v1154_v23 = vld [vmem:[#allocation3 + $0x50] sm:$0xff] }
  0x65   : > { %4381 = vmatmul.mubr.msk.bf16.vlgmr.msra.gmra.mrb[0].mxu0 %vm473_vm1, %v1465_v26  ;;  %v1155_v60 = vld [vmem:[#allocation3 + $0x60] sm:$0xff]  ;;  %v1159_v41 = vpack.c.bf16 %v1153_v44, %v1152_v33  ;;  %v1156_v45 = vld [vmem:[#allocation3 + $0x70] sm:$0xff] }
  0x66   : > { %4384 = vmatprep.mubr.msk.bf16.mxu0 %vm473_vm1, %v1466_v52  ;;  %4389 = vmatpush3.bf16.msra.mxu0 %v1585_v34  ;;  %v1160_v25 = vpack.c.bf16 %v1155_v60, %v1154_v23  ;;  %v1157_v3 = vld [vmem:[#allocation3 + $0x80] sm:$0xff]  ;;  %v1253_v15 = vld [vmem:[#allocation2 + $0x21] sm:$0xff] }
  0x67   : > { %4822 = vmatprep.subr.msk.bf16.mxu0 %vm899_vm0, %v4051_v58  ;;  %v1252_v13 = vld [vmem:[#allocation2 + $0x11] sm:$0xff]  ;;  %v1161_v16 = vpack.c.bf16 %v1157_v3, %v1156_v45 }
  0x68   : > { %4335 = vmatmul.mubr.msk.bf16.gmra.mrb[4].mxu1 %vm473_vm1, %v871_v8  ;;  %v1260_v20 = vpack.c.bf16 %v1253_v15, %v1252_v13  ;;  %v1667_v7 = vld [vmem:[#allocation5 + $0x81] sm:$0xff] }
  0x69   : > { %v5001_v36 = vpop.eup %5000  ;;  %4340 = vmatprep.mubr.msk.bf16.mxu1 %vm473_vm1, %v1056_v37  ;;  %v5793_v37 = vld [vmem:[%s6218_s6] sm:$0xf] }
  0x6a   : > { %v5003_v9 = vpop.eup %5002  ;;  %v626_v43 = vmul.f32 %v5001_v36, %v5641_v19 }
  0x6b   : > { %v5005_v22 = vpop.eup %5004  ;;  %v627_v17 = vmul.f32 %v5003_v9, %v5647_v54  ;;  %v1177_v54 = vsel %vm899_vm0, %v4026_v10, 0  ;;  %v1670_v10 = vpack.c.bf16 %v1054_v51, %v5724_v42 }
  0x6c   : > { %v5007_v46 = vpop.eup %5006  ;;  %635 = vst.msk [vmem:[#allocation2 + $0x31] sm:$0xff] %vm473_vm1, %v626_v43  ;;  %v628_v18 = vmul.f32 %v5005_v22, %v5650_v57  ;;  %v4031_v57 = vld [vmem:[%s6216_s4 + $0x10] sm:$0xf]  ;;  %v4056_v43 = vld [vmem:[%s6217_s5] ss:$0 sm:$0xff] }
  0x6d   : > { %v5009_v48 = vpop.eup %5008  ;;  %4385 = vmatmul.mubr.msk.bf16.gmra.mrb[4].mxu0 %vm473_vm1, %v1467_v39  ;;  %636 = vst.msk [vmem:[#allocation2 + $0x41] sm:$0xff] %vm473_vm1, %v627_v17  ;;  %v629_v63 = vmul.f32 %v5007_v46, %v5655_v61  ;;  %v1567_v61 = vpack.c.bf16 %v5617_v11, %v5602_v1  ;;  %v1565_v1 = vld [vmem:[#allocation4 + $0x81] sm:$0xff]  ;;  %v1279_v0 = vsel %vm899_vm0, %v4031_v57, 0 }
  0x6e   : > { %v5011_v19 = vpop.eup %5010  ;;  %4390 = vmatprep.mubr.msk.bf16.mxu0 %vm473_vm1, %v1566_v40  ;;  %637 = vst.msk [vmem:[#allocation2 + $0x51] sm:$0xff] %vm473_vm1, %v628_v18  ;;  %v630_v31 = vmul.f32 %v5009_v48, %v5659_v27  ;;  %v1055_v27 = vld [vmem:[#allocation5 + $0x71] sm:$0xff]  ;;  %v1569_v11 = vpack.c.bf16 %v1565_v1, %v5638_v47  ;;  %v1669_v47 = vpack.c.bf16 %v5722_v14, %v5718_v2 }
  0x6f   : > { %638 = vst.msk [vmem:[#allocation2 + $0x61] sm:$0xff] %vm473_vm1, %v629_v63  ;;  %v631_v50 = vmul.f32 %v5011_v19, %v5664_v29  ;;  %v1687_v29 = vsel %vm899_vm0, %v4051_v58, 0  ;;  %v1059_v56 = vpack.c.bf16 %v1055_v27, %v1054_v51  ;;  %v1671_v24 = vpack.c.bf16 %v1667_v7, %v1055_v27  ;;  %v4065_v58 = vld [vmem:[%s6218_s6 + $0x4] sm:$0xf] }
  0x70   : > { %4341 = vmatmul.mubr.msk.bf16.vlgmr.msra.gmra.mrb[0].mxu1 %vm473_vm1, %v1057_v28  ;;  %639 = vst.msk [vmem:[#allocation2 + $0x71] sm:$0xff] %vm473_vm1, %v630_v31  ;;  %v1882_v62 = vsel %vm899_vm0, %v4065_v58, 0 }
  0x71   : > { %4349 = vmatpush3.bf16.msra.mxu1 %v1177_v54  ;;  %4344 = vmatprep.mubr.msk.bf16.mxu1 %vm473_vm1, %v1058_v49  ;;  %640 = vst.msk [vmem:[#allocation2 + $0x81] sm:$0xff] %vm473_vm1, %v631_v50 }
  0x72   : > { %4818 = vmatprep.subr.msk.bf16.mxu1 %vm899_vm0, %v4031_v57 }
  0x73   : > { %v1254_v26 = vld [vmem:[#allocation2 + $0x31] sm:$0xff] }
  0x74   : > { %v1255_v30 = vld [vmem:[#allocation2 + $0x41] sm:$0xff] }
  0x75   : > { %4391 = vmatmul.mubr.msk.bf16.vlgmr.msra.gmra.mrb[0].mxu0 %vm473_vm1, %v1567_v61  ;;  %v1256_v4 = vld [vmem:[#allocation2 + $0x51] sm:$0xff]  ;;  %v1261_v12 = vpack.c.bf16 %v1255_v30, %v1254_v26 }
  0x76   : > { %4394 = vmatprep.mubr.msk.bf16.mxu0 %vm473_vm1, %v1568_v53  ;;  %4399 = vmatpush3.bf16.msra.mxu0 %v1687_v29  ;;  %v1257_v52 = vld [vmem:[#allocation2 + $0x61] sm:$0xff] }
  0x77   : > { %v1262_v32 = vpack.c.bf16 %v1257_v52, %v1256_v4  ;;  %v1258_v55 = vld [vmem:[#allocation2 + $0x71] sm:$0xff] }
  0x78   : > { %4345 = vmatmul.mubr.msk.bf16.gmra.mrb[4].mxu1 %vm473_vm1, %v1059_v56  ;;  %v1259_v34 = vld [vmem:[#allocation2 + $0x81] sm:$0xff] }
  0x79   : > { %4350 = vmatprep.mubr.msk.bf16.mxu1 %vm473_vm1, %v1158_v59  ;;  %v1263_v8 = vpack.c.bf16 %v1259_v34, %v1258_v55 }
  0x7d   : > { %4395 = vmatmul.mubr.msk.bf16.gmra.mrb[4].mxu0 %vm473_vm1, %v1569_v11 }
  0x7e   : > { %4400 = vmatprep.mubr.msk.bf16.mxu0 %vm473_vm1, %v1668_v38 }
  0x80   : > { %4351 = vmatmul.mubr.msk.bf16.vlgmr.msra.gmra.mrb[0].mxu1 %vm473_vm1, %v1159_v41 }
  0x81   : > { %4359 = vmatpush3.bf16.msra.mxu1 %v1279_v0  ;;  %4354 = vmatprep.mubr.msk.bf16.mxu1 %vm473_vm1, %v1160_v25 }
  0x82   : > { %4823 = vmatprep.subr.msk.bf16.mxu1 %vm899_vm0, %v4065_v58 }
  0x85   : > { %4401 = vmatmul.mubr.msk.bf16.vlgmr.msra.gmra.mrb[0].mxu0 %vm473_vm1, %v1669_v47 }
  0x86   : > { %4404 = vmatprep.mubr.msk.bf16.mxu0 %vm473_vm1, %v1670_v10 }
  0x88   : > { %4355 = vmatmul.mubr.msk.bf16.gmra.mrb[4].mxu1 %vm473_vm1, %v1161_v16 }
  0x89   : > { %4360 = vmatprep.mubr.msk.bf16.mxu1 %vm473_vm1, %v1260_v20 }
  0x8d   : > { %4405 = vmatmul.mubr.msk.bf16.gmra.mrb[4].mxu0 %vm473_vm1, %v1671_v24 }
  0x90   : > { %4361 = vmatmul.mubr.msk.bf16.vlgmr.msra.gmra.mrb[0].mxu1 %vm473_vm1, %v1261_v12 }
  0x91   : > { %4364 = vmatprep.mubr.msk.bf16.mxu1 %vm473_vm1, %v1262_v32  ;;  %4409 = vmatpush3.bf16.msra.mxu1 %v1882_v62 }
  0x92   : > { %4824 = vmatprep.subr.msk.bf16.mxu1 %vm899_vm0, %v5793_v37 }
  0x98   : > { %4365 = vmatmul.mubr.msk.bf16.gmra.mrb[4].mxu1 %vm473_vm1, %v1263_v8 }
 0x158   : > { %v4402_v36 = vpop.f32.mrb[0].mxu0 }
 0x159   : > { %v1723_v39 = vpop.f32.mrb[1].mxu0 }
 0x15a   : > { %v4403_v5 = vpop.f32.mrb[2].mxu0 }
 0x15b   : > { %v1726_v6 = vpop.f32.mrb[3].mxu0 }
 0x160   : > { %v4406_v2 = vpop.f32.mrb[4].mxu0 }
 0x161   : > { %v1739_v9 = vpop.f32.mrb[5].mxu0 }
 0x162   : > { %v4407_v40 = vpop.f32.mrb[6].mxu0 }
 0x163   : > { %v1742_v14 = vpop.f32.mrb[7].mxu0  ;;  %v4362_v42 = vpop.f32.mrb[0].mxu1 }
 0x164   : > { %v4598_v22 = vadd.f32 %v4402_v36, %v4362_v42  ;;  %v1315_v17 = vpop.f32.mrb[1].mxu1 }
 0x165   : > { %v4599_v46 = vadd.f32 %v1723_v39, %v1315_v17  ;;  %v4363_v28 = vpop.f32.mrb[2].mxu1 }
 0x166   : > { %v1771_v18 = vadd.f32 %v4598_v22, %v4056_v43  ;;  %v4600_v48 = vadd.f32 %v4403_v5, %v4363_v28  ;;  %v1318_v49 = vpop.f32.mrb[3].mxu1 }
 0x167   : > { %v1769_v63 = vadd.f32 %v4599_v46, %v4056_v43  ;;  %v4601_v19 = vadd.f32 %v1726_v6, %v1318_v49  ;;  %v1962_v49 = vsel %vm899_vm0, %v5793_v37, 0 }
 0x168   : > { %v4059_v54 = vmul.f32 -1.442695, %v1771_v18  ;;  %v1772_v31 = vadd.f32 %v4600_v48, %v4056_v43 }
 0x169   : > { %v4057_v57 = vmul.f32 -1.442695, %v1769_v63  ;;  %v1770_v50 = vadd.f32 %v4601_v19, %v4056_v43 }
 0x16a   : > { %5012 = vpow2.f32 %v4059_v54  ;;  %v4060_v61 = vmul.f32 -1.442695, %v1772_v31 }
 0x16b   : > { %5014 = vpow2.f32 %v4057_v57  ;;  %v4058_v51 = vmul.f32 -1.442695, %v1770_v50  ;;  %v4366_v27 = vpop.f32.mrb[4].mxu1  ;;  %v5841_v57 = vld [vmem:[#allocation6] sm:$0xff] }
 0x16c   : > { %5016 = vpow2.f32 %v4060_v61  ;;  %v4602_v53 = vadd.f32 %v4406_v2, %v4366_v27  ;;  %v1331_v35 = vpop.f32.mrb[5].mxu1 }
 0x16d   : > { %5018 = vpow2.f32 %v4058_v51  ;;  %v4603_v21 = vadd.f32 %v1739_v9, %v1331_v35  ;;  %v4367_v29 = vpop.f32.mrb[6].mxu1  ;;  %v5806_v9 = vld [vmem:[#allocation6 + $0x1] sm:$0xff] }
 0x16e   : > { %v1775_v56 = vadd.f32 %v4602_v53, %v4056_v43  ;;  %v4604_v59 = vadd.f32 %v4407_v40, %v4367_v29  ;;  %v1334_v1 = vpop.f32.mrb[7].mxu1 }
 0x16f   : > { %v1773_v11 = vadd.f32 %v4603_v21, %v4056_v43  ;;  %v4605_v33 = vadd.f32 %v1742_v14, %v1334_v1 }
 0x170   : > { %v4063_v44 = vmul.f32 -1.442695, %v1775_v56  ;;  %v1776_v38 = vadd.f32 %v4604_v59, %v4056_v43 }
 0x171   : > { %v4061_v23 = vmul.f32 -1.442695, %v1773_v11  ;;  %v1774_v60 = vadd.f32 %v4605_v33, %v4056_v43 }
 0x172   : > { %5020 = vpow2.f32 %v4063_v44  ;;  %v4064_v41 = vmul.f32 -1.442695, %v1776_v38  ;;  %v5870_v44 = vld [vmem:[#allocation6 + $0x2] sm:$0xff] }
 0x173   : > { %5022 = vpow2.f32 %v4061_v23  ;;  %v4062_v25 = vmul.f32 -1.442695, %v1774_v60 }
 0x174   : > { %v5013_v0 = vpop.eup %5012  ;;  %5024 = vpow2.f32 %v4064_v41 }
 0x175   : > { %v5015_v47 = vpop.eup %5014  ;;  %v1803_v45 = vadd.f32 1.0, %v5013_v0  ;;  %5026 = vpow2.f32 %v4062_v25 }
 0x176   : > { %v5017_v3 = vpop.eup %5016  ;;  %v1801_v10 = vadd.f32 1.0, %v5015_v47 }
 0x177   : > { %v5019_v13 = vpop.eup %5018  ;;  %5028 = vrcp.f32 %v1803_v45  ;;  %v1804_v15 = vadd.f32 1.0, %v5017_v3 }
 0x178   : > { %5030 = vrcp.f32 %v1801_v10  ;;  %v1802_v16 = vadd.f32 1.0, %v5019_v13 }
 0x179   : > { %5032 = vrcp.f32 %v1804_v15  ;;  %v4084_v15 = vld [vmem:[%s6218_s6 + $0x10] sm:$0xf] }
 0x17a   : > { %5034 = vrcp.f32 %v1802_v16 }
 0x17c   : > { %v5021_v20 = vpop.eup %5020 }
 0x17d   : > { %v5023_v7 = vpop.eup %5022  ;;  %v1807_v24 = vadd.f32 1.0, %v5021_v20 }
 0x17e   : > { %v5025_v26 = vpop.eup %5024  ;;  %v1805_v30 = vadd.f32 1.0, %v5023_v7 }
 0x17f   : > { %v5027_v4 = vpop.eup %5026  ;;  %5036 = vrcp.f32 %v1807_v24  ;;  %v1808_v52 = vadd.f32 1.0, %v5025_v26 }
 0x180   : > { %5038 = vrcp.f32 %v1805_v30  ;;  %v1806_v12 = vadd.f32 1.0, %v5027_v4  ;;  %v2260_v30 = vsel %vm899_vm0, %v4084_v15, 0 }
 0x181   : > { %v5029_v32 = vpop.eup %5028  ;;  %5040 = vrcp.f32 %v1808_v52  ;;  %v4089_v52 = vld [vmem:[%s6218_s6 + $0x14] sm:$0xf] }
 0x182   : > { %v5031_v55 = vpop.eup %5030  ;;  %v1827_v34 = vmul.f32 %v5029_v32, %v1771_v18  ;;  %5042 = vrcp.f32 %v1806_v12 }
 0x183   : > { %v5033_v8 = vpop.eup %5032  ;;  %v1825_v58 = vmul.f32 %v5031_v55, %v1769_v63  ;;  %v4074_v63 = vld [vmem:[%s6218_s6 + $0x8] sm:$0xf] }
 0x184   : > { %v5035_v62 = vpop.eup %5034  ;;  %1836 = vst.msk [vmem:[#allocation6 + $0x31] sm:$0xff] %vm473_vm1, %v1827_v34  ;;  %v1828_v36 = vmul.f32 %v5033_v8, %v1772_v31  ;;  %v2362_v8 = vsel %vm899_vm0, %v4089_v52, 0 }
 0x185   : > { %1834 = vst.msk [vmem:[#allocation6 + $0x11] sm:$0xff] %vm473_vm1, %v1825_v58  ;;  %v1826_v39 = vmul.f32 %v5035_v62, %v1770_v50  ;;  %v4094_v62 = vld [vmem:[%s6218_s6 + $0x18] sm:$0xf] }
 0x186   : > { %1837 = vst.msk [vmem:[#allocation6 + $0x41] sm:$0xff] %vm473_vm1, %v1828_v36 }
 0x187   : > { %1835 = vst.msk [vmem:[#allocation6 + $0x21] sm:$0xff] %vm473_vm1, %v1826_v39 }
 0x189   : > { %v5037_v5 = vpop.eup %5036 }
 0x18a   : > { %v5039_v6 = vpop.eup %5038  ;;  %v1831_v2 = vmul.f32 %v5037_v5, %v1775_v56  ;;  %v2056_v56 = vsel %vm899_vm0, %v4074_v63, 0 }
 0x18b   : > { %v5041_v40 = vpop.eup %5040  ;;  %v1829_v14 = vmul.f32 %v5039_v6, %v1773_v11  ;;  %v5817_v18 = vld [vmem:[#allocation6 + $0x31] sm:$0xff]  ;;  %v4079_v11 = vld [vmem:[%s6218_s6 + $0xc] sm:$0xf] }
 0x18c   : > { %v5043_v42 = vpop.eup %5042  ;;  %1840 = vst.msk [vmem:[#allocation6 + $0x71] sm:$0xff] %vm473_vm1, %v1831_v2  ;;  %v1832_v43 = vmul.f32 %v5041_v40, %v1776_v38  ;;  %v5809_v22 = vld [vmem:[#allocation6 + $0x11] sm:$0xff]  ;;  %v2158_v3 = vsel %vm899_vm0, %v4079_v11, 0  ;;  %v2465_v2 = vsel %vm899_vm0, %v4094_v62, 0 }
 0x18d   : > { %1838 = vst.msk [vmem:[#allocation6 + $0x51] sm:$0xff] %vm473_vm1, %v1829_v14  ;;  %v1830_v17 = vmul.f32 %v5043_v42, %v1774_v60  ;;  %v1863_v46 = vpack.c.bf16 %v5809_v22, %v5806_v9  ;;  %v5833_v19 = vld [vmem:[#allocation6 + $0x41] sm:$0xff]  ;;  %v1843_v37 = vld [vmem:[#allocation6 + $0x10] sm:$0xff]  ;;  %v4099_v14 = vld [vmem:[%s6218_s6 + $0x1c] sm:$0xf] }
 0x18e   : > { %1841 = vst.msk [vmem:[#allocation6 + $0x81] sm:$0xff] %vm473_vm1, %v1832_v43  ;;  %v5815_v28 = vld [vmem:[#allocation6 + $0x21] sm:$0xff]  ;;  %v1850_v27 = vpack.c.bf16 %v1843_v37, %v5841_v57  ;;  %v1845_v21 = vld [vmem:[#allocation6 + $0x30] sm:$0xff]  ;;  %v2242_v34 = vpack.c.bf16 %v5833_v19, %v5817_v18 }
 0x18f   : > { %1839 = vst.msk [vmem:[#allocation6 + $0x61] sm:$0xff] %vm473_vm1, %v1830_v17  ;;  %4410 = vmatprep.mubr.msk.bf16.mxu1 %vm473_vm1, %v1863_v46  ;;  %v5823_v48 = vpack.c.bf16 %v5817_v18, %v5815_v28  ;;  %v1844_v53 = vld [vmem:[#allocation6 + $0x20] sm:$0xff]  ;;  %v2030_v38 = vld [vmem:[#allocation6 + $0x12] sm:$0xff]  ;;  %v2241_v55 = vpack.c.bf16 %v5815_v28, %v5809_v22  ;;  %v2567_v22 = vsel %vm899_vm0, %v4099_v14, 0 }
 0x190   : > { %v5857_v29 = vpack.c.bf16 %v1845_v21, %v1844_v53  ;;  %v1846_v59 = vld [vmem:[#allocation6 + $0x40] sm:$0xff]  ;;  %v2037_v41 = vpack.c.bf16 %v2030_v38, %v5870_v44  ;;  %v2032_v47 = vld [vmem:[#allocation6 + $0x32] sm:$0xff]  ;;  %v2139_v24 = vpack.c.bf16 %v1844_v53, %v1843_v37 }
 0x191   : > { %4411 = vmatmul.mubr.msk.bf16.vlgmr.msra.gmra.mrb[8].mxu1 %vm473_vm1, %v5823_v48  ;;  %v2031_v25 = vld [vmem:[#allocation6 + $0x22] sm:$0xff]  ;;  %v2140_v26 = vpack.c.bf16 %v1846_v59, %v1845_v21  ;;  %v5937_v46 = vld [vmem:[#allocation6 + $0x90] sm:$0xff] }
 0x192   : > { %4419 = vmatpush3.bf16.msra.mxu1 %v1962_v49  ;;  %v5878_v45 = vpack.c.bf16 %v2032_v47, %v2031_v25  ;;  %v2033_v10 = vld [vmem:[#allocation6 + $0x42] sm:$0xff]  ;;  %v2343_v5 = vpack.c.bf16 %v2031_v25, %v2030_v38  ;;  %v5948_v49 = vld [vmem:[#allocation6 + $0x91] sm:$0xff] }
 0x193   : > { %4825 = vmatprep.subr.msk.bf16.mxu1 %vm899_vm0, %v4074_v63  ;;  %v5845_v61 = vld [vmem:[#allocation6 + $0x71] sm:$0xff]  ;;  %v2344_v6 = vpack.c.bf16 %v2033_v10, %v2032_v47  ;;  %v4104_v17 = vld [vmem:[%s6218_s6 + $0x20] sm:$0xf] }
 0x194   : > { %v5835_v54 = vld [vmem:[#allocation6 + $0x51] sm:$0xff]  ;;  %v2669_v18 = vsel %vm899_vm0, %v4104_v17, 0 }
 0x195   : > { %v5839_v31 = vpack.c.bf16 %v5835_v54, %v5833_v19  ;;  %v1847_v35 = vld [vmem:[#allocation6 + $0x50] sm:$0xff]  ;;  %v2138_v12 = vld [vmem:[#allocation6 + $0x80] sm:$0xff] }
 0x196   : > { %v5843_v50 = vld [vmem:[#allocation6 + $0x61] sm:$0xff]  ;;  %v5860_v1 = vpack.c.bf16 %v1847_v35, %v1846_v59  ;;  %v1849_v23 = vld [vmem:[#allocation6 + $0x70] sm:$0xff]  ;;  %v2449_v28 = vpack.c.bf16 %v5937_v46, %v2138_v12 }
 0x197   : > { %4414 = vmatprep.mubr.msk.bf16.mxu1 %vm473_vm1, %v5839_v31  ;;  %v5851_v51 = vpack.c.bf16 %v5845_v61, %v5843_v50  ;;  %v1848_v33 = vld [vmem:[#allocation6 + $0x60] sm:$0xff]  ;;  %v2034_v0 = vld [vmem:[#allocation6 + $0x52] sm:$0xff]  ;;  %v2142_v32 = vpack.c.bf16 %v2138_v12, %v1849_v23  ;;  %v2243_v58 = vpack.c.bf16 %v5843_v50, %v5835_v54 }
 0x198   : > { %v5872_v60 = vpack.c.bf16 %v1849_v23, %v1848_v33  ;;  %v5881_v13 = vpack.c.bf16 %v2034_v0, %v2033_v10  ;;  %v2035_v16 = vld [vmem:[#allocation6 + $0x62] sm:$0xff]  ;;  %v2036_v20 = vld [vmem:[#allocation6 + $0x72] sm:$0xff]  ;;  %v2141_v4 = vpack.c.bf16 %v1848_v33, %v1847_v35  ;;  %v4109_v50 = vld [vmem:[%s6219_s7] ss:$0 sm:$0xff] }
 0x199   : > { %4415 = vmatmul.mubr.msk.bf16.gmra.mrb[12].mxu1 %vm473_vm1, %v5851_v51  ;;  %v2040_v7 = vpack.c.bf16 %v2036_v20, %v2035_v16  ;;  %v2240_v36 = vld [vmem:[#allocation6 + $0x81] sm:$0xff]  ;;  %v2345_v40 = vpack.c.bf16 %v2035_v16, %v2034_v0 }
 0x19a   : > { %4420 = vmatprep.mubr.msk.bf16.mxu1 %vm473_vm1, %v1850_v27  ;;  %v2244_v39 = vpack.c.bf16 %v2240_v36, %v5845_v61  ;;  %v2342_v42 = vld [vmem:[#allocation6 + $0x82] sm:$0xff]  ;;  %v2551_v63 = vpack.c.bf16 %v5948_v49, %v2240_v36 }
 0x19b   : > { %v2346_v43 = vpack.c.bf16 %v2342_v42, %v2036_v20  ;;  %v4118_v54 = vld [vmem:[%s6220_s8 + $0x4] sm:$0xf] }
 0x19c   : > { %4832 = vmatprep.subr.msk.bf16.mxu0 %vm899_vm0, %v4118_v54  ;;  %v2863_v37 = vsel %vm899_vm0, %v4118_v54, 0 }
 0x19d   : > { %4499 = vmatpush3.bf16.msra.mxu0 %v2863_v37 }
 0x1a1   : > { %4421 = vmatmul.mubr.msk.bf16.vlgmr.msra.gmra.mrb[8].mxu1 %vm473_vm1, %v5857_v29 }
 0x1a2   : > { %4429 = vmatpush3.bf16.msra.mxu1 %v2056_v56  ;;  %4424 = vmatprep.mubr.msk.bf16.mxu1 %vm473_vm1, %v5860_v1 }
 0x1a3   : > { %4826 = vmatprep.subr.msk.bf16.mxu1 %vm899_vm0, %v4079_v11 }
 0x1a9   : > { %4425 = vmatmul.mubr.msk.bf16.gmra.mrb[12].mxu1 %vm473_vm1, %v5872_v60 }
 0x1aa   : > { %4430 = vmatprep.mubr.msk.bf16.mxu1 %vm473_vm1, %v2037_v41 }
 0x1b1   : > { %4431 = vmatmul.mubr.msk.bf16.vlgmr.msra.gmra.mrb[8].mxu1 %vm473_vm1, %v5878_v45 }
 0x1b2   : > { %4439 = vmatpush3.bf16.msra.mxu1 %v2158_v3  ;;  %4434 = vmatprep.mubr.msk.bf16.mxu1 %vm473_vm1, %v5881_v13 }
 0x1b3   : > { %4827 = vmatprep.subr.msk.bf16.mxu1 %vm899_vm0, %v4084_v15 }
 0x1b9   : > { %4435 = vmatmul.mubr.msk.bf16.gmra.mrb[12].mxu1 %vm473_vm1, %v2040_v7 }
 0x1ba   : > { %4440 = vmatprep.mubr.msk.bf16.mxu1 %vm473_vm1, %v2139_v24 }
 0x1c1   : > { %4441 = vmatmul.mubr.msk.bf16.vlgmr.msra.gmra.mrb[8].mxu1 %vm473_vm1, %v2140_v26 }
 0x1c2   : > { %4449 = vmatpush3.bf16.msra.mxu1 %v2260_v30  ;;  %4444 = vmatprep.mubr.msk.bf16.mxu1 %vm473_vm1, %v2141_v4 }
 0x1c3   : > { %4828 = vmatprep.subr.msk.bf16.mxu1 %vm899_vm0, %v4089_v52 }
 0x1c9   : > { %4445 = vmatmul.mubr.msk.bf16.gmra.mrb[12].mxu1 %vm473_vm1, %v2142_v32 }
 0x1ca   : > { %4450 = vmatprep.mubr.msk.bf16.mxu1 %vm473_vm1, %v2241_v55 }
 0x1d1   : > { %4451 = vmatmul.mubr.msk.bf16.vlgmr.msra.gmra.mrb[8].mxu1 %vm473_vm1, %v2242_v34 }
 0x1d2   : > { %4459 = vmatpush3.bf16.msra.mxu1 %v2362_v8  ;;  %4454 = vmatprep.mubr.msk.bf16.mxu1 %vm473_vm1, %v2243_v58 }
 0x1d3   : > { %4829 = vmatprep.subr.msk.bf16.mxu1 %vm899_vm0, %v4094_v62 }
 0x1d9   : > { %4455 = vmatmul.mubr.msk.bf16.gmra.mrb[12].mxu1 %vm473_vm1, %v2244_v39 }
 0x1da   : > { %4460 = vmatprep.mubr.msk.bf16.mxu1 %vm473_vm1, %v2343_v5 }
 0x1e1   : > { %4461 = vmatmul.mubr.msk.bf16.vlgmr.msra.gmra.mrb[8].mxu1 %vm473_vm1, %v2344_v6 }
 0x1e2   : > { %4469 = vmatpush3.bf16.msra.mxu1 %v2465_v2  ;;  %4464 = vmatprep.mubr.msk.bf16.mxu1 %vm473_vm1, %v2345_v40 }
 0x1e3   : > { %4830 = vmatprep.subr.msk.bf16.mxu1 %vm899_vm0, %v4099_v14 }
 0x1e9   : > { %4465 = vmatmul.mubr.msk.bf16.gmra.mrb[12].mxu1 %vm473_vm1, %v2346_v43 }
 0x1ea   : > { %4470 = vmatprep.mubr.msk.bf16.mxu1 %vm473_vm1, %v5857_v29 }
 0x1f1   : > { %4471 = vmatmul.mubr.msk.bf16.vlgmr.msra.gmra.mrb[8].mxu1 %vm473_vm1, %v5860_v1 }
 0x1f2   : > { %4479 = vmatpush3.bf16.msra.mxu1 %v2567_v22  ;;  %4474 = vmatprep.mubr.msk.bf16.mxu1 %vm473_vm1, %v5872_v60 }
 0x1f3   : > { %4831 = vmatprep.subr.msk.bf16.mxu1 %vm899_vm0, %v4104_v17 }
 0x1f9   : > { %4475 = vmatmul.mubr.msk.bf16.gmra.mrb[12].mxu1 %vm473_vm1, %v2449_v28 }
 0x1fa   : > { %4480 = vmatprep.mubr.msk.bf16.mxu1 %vm473_vm1, %v5823_v48  ;;  %v5957_v48 = vld [vmem:[#allocation6 + $0x92] sm:$0xff] }
 0x1fb   : > { %v2653_v19 = vpack.c.bf16 %v5957_v48, %v2342_v42 }
 0x201   : > { %4481 = vmatmul.mubr.msk.bf16.vlgmr.msra.gmra.mrb[8].mxu1 %vm473_vm1, %v5839_v31  ;;  %v5967_v31 = vld [vmem:[%s6220_s8] sm:$0xf] }
 0x202   : > { %4489 = vmatpush3.bf16.msra.mxu1 %v2669_v18  ;;  %4484 = vmatprep.mubr.msk.bf16.mxu1 %vm473_vm1, %v5851_v51 }
 0x203   : > { %4833 = vmatprep.subr.msk.bf16.mxu0 %vm899_vm0, %v5967_v31 }
 0x209   : > { %4485 = vmatmul.mubr.msk.bf16.gmra.mrb[12].mxu1 %vm473_vm1, %v2551_v63 }
 0x20a   : > { %4490 = vmatprep.mubr.msk.bf16.mxu1 %vm473_vm1, %v5878_v45 }
 0x211   : > { %4491 = vmatmul.mubr.msk.bf16.vlgmr.msra.gmra.mrb[8].mxu1 %vm473_vm1, %v5881_v13 }
 0x212   : > { %4494 = vmatprep.mubr.msk.bf16.mxu1 %vm473_vm1, %v2040_v7 }
 0x219   : > { %4495 = vmatmul.mubr.msk.bf16.gmra.mrb[12].mxu1 %vm473_vm1, %v2653_v19 }
 0x2e4   : > { %v4492_v61 = vpop.f32.mrb[8].mxu1 }
 0x2e5   : > { %v2753_v51 = vadd.f32 %v4492_v61, %v4109_v50  ;;  %v2705_v27 = vpop.f32.mrb[9].mxu1 }
 0x2e6   : > { %v2751_v53 = vadd.f32 %v4109_v50, %v2705_v27  ;;  %v4493_v35 = vpop.f32.mrb[10].mxu1 }
 0x2e7   : > { %v4112_v21 = vmul.f32 -1.442695, %v2753_v51  ;;  %v2754_v29 = vadd.f32 %v4493_v35, %v4109_v50  ;;  %v2708_v56 = vpop.f32.mrb[11].mxu1  ;;  %v2943_v35 = vsel %vm899_vm0, %v5967_v31, 0 }
 0x2e8   : > { %v4110_v59 = vmul.f32 -1.442695, %v2751_v53  ;;  %v2752_v1 = vadd.f32 %v4109_v50, %v2708_v56 }
 0x2e9   : > { %5044 = vpow2.f32 %v4112_v21  ;;  %v4113_v11 = vmul.f32 -1.442695, %v2754_v29 }
 0x2ea   : > { %5046 = vpow2.f32 %v4110_v59  ;;  %v4111_v33 = vmul.f32 -1.442695, %v2752_v1 }
 0x2eb   : > { %5048 = vpow2.f32 %v4113_v11 }
 0x2ec   : > { %5050 = vpow2.f32 %v4111_v33  ;;  %v4496_v38 = vpop.f32.mrb[12].mxu1 }
 0x2ed   : > { %v2757_v23 = vadd.f32 %v4496_v38, %v4109_v50  ;;  %v2721_v60 = vpop.f32.mrb[13].mxu1 }
 0x2ee   : > { %v2755_v41 = vadd.f32 %v4109_v50, %v2721_v60  ;;  %v4497_v25 = vpop.f32.mrb[14].mxu1 }
 0x2ef   : > { %v4116_v0 = vmul.f32 -1.442695, %v2757_v23  ;;  %v2758_v47 = vadd.f32 %v4497_v25, %v4109_v50  ;;  %v2724_v45 = vpop.f32.mrb[15].mxu1 }
 0x2f0   : > { %v4114_v3 = vmul.f32 -1.442695, %v2755_v41  ;;  %v2756_v10 = vadd.f32 %v4109_v50, %v2724_v45  ;;  %v4132_v45 = vld [vmem:[%s6220_s8 + $0xc] sm:$0xf] }
 0x2f1   : > { %5052 = vpow2.f32 %v4116_v0  ;;  %v4117_v13 = vmul.f32 -1.442695, %v2758_v47 }
 0x2f2   : > { %5054 = vpow2.f32 %v4114_v3  ;;  %v4115_v15 = vmul.f32 -1.442695, %v2756_v10 }
 0x2f3   : > { %v5045_v16 = vpop.eup %5044  ;;  %5056 = vpow2.f32 %v4117_v13 }
 0x2f4   : > { %v5047_v20 = vpop.eup %5046  ;;  %v2785_v7 = vadd.f32 1.0, %v5045_v16  ;;  %5058 = vpow2.f32 %v4115_v15 }
 0x2f5   : > { %v5049_v24 = vpop.eup %5048  ;;  %v2783_v26 = vadd.f32 1.0, %v5047_v20 }
 0x2f6   : > { %v5051_v30 = vpop.eup %5050  ;;  %5060 = vrcp.f32 %v2785_v7  ;;  %v2786_v4 = vadd.f32 1.0, %v5049_v24 }
 0x2f7   : > { %5062 = vrcp.f32 %v2783_v26  ;;  %v2784_v52 = vadd.f32 1.0, %v5051_v30  ;;  %v3139_v26 = vsel %vm899_vm0, %v4132_v45, 0 }
 0x2f8   : > { %5064 = vrcp.f32 %v2786_v4 }
 0x2f9   : > { %5066 = vrcp.f32 %v2784_v52  ;;  %v4137_v52 = vld [vmem:[%s6220_s8 + $0x10] sm:$0xf] }
 0x2fb   : > { %v5053_v12 = vpop.eup %5052 }
 0x2fc   : > { %v5055_v32 = vpop.eup %5054  ;;  %v2789_v55 = vadd.f32 1.0, %v5053_v12 }
 0x2fd   : > { %v5057_v34 = vpop.eup %5056  ;;  %v2787_v8 = vadd.f32 1.0, %v5055_v32 }
 0x2fe   : > { %v5059_v58 = vpop.eup %5058  ;;  %5068 = vrcp.f32 %v2789_v55  ;;  %v2790_v62 = vadd.f32 1.0, %v5057_v34 }
 0x2ff   : > { %5070 = vrcp.f32 %v2787_v8  ;;  %v2788_v36 = vadd.f32 1.0, %v5059_v58  ;;  %v3241_v8 = vsel %vm899_vm0, %v4137_v52, 0 }
 0x300   : > { %v5061_v39 = vpop.eup %5060  ;;  %5072 = vrcp.f32 %v2790_v62  ;;  %v4142_v62 = vld [vmem:[%s6220_s8 + $0x14] sm:$0xf] }
 0x301   : > { %v5063_v5 = vpop.eup %5062  ;;  %v2809_v6 = vmul.f32 %v5061_v39, %v2753_v51  ;;  %5074 = vrcp.f32 %v2788_v36 }
 0x302   : > { %v5065_v2 = vpop.eup %5064  ;;  %v2807_v40 = vmul.f32 %v5063_v5, %v2751_v53 }
 0x303   : > { %v5067_v14 = vpop.eup %5066  ;;  %2817 = vst.msk [vmem:[#allocation6 + $0x31] sm:$0xff] %vm473_vm1, %v2809_v6  ;;  %v2810_v42 = vmul.f32 %v5065_v2, %v2754_v29  ;;  %v3343_v2 = vsel %vm899_vm0, %v4142_v62, 0 }
 0x304   : > { %2815 = vst.msk [vmem:[#allocation6 + $0x11] sm:$0xff] %vm473_vm1, %v2807_v40  ;;  %v2808_v43 = vmul.f32 %v5067_v14, %v2752_v1  ;;  %v4147_v14 = vld [vmem:[%s6220_s8 + $0x18] sm:$0xf] }
 0x305   : > { %2818 = vst.msk [vmem:[#allocation6 + $0x41] sm:$0xff] %vm473_vm1, %v2810_v42 }
 0x306   : > { %2816 = vst.msk [vmem:[#allocation6 + $0x21] sm:$0xff] %vm473_vm1, %v2808_v43 }
 0x308   : > { %v5069_v22 = vpop.eup %5068 }
 0x309   : > { %v5071_v17 = vpop.eup %5070  ;;  %v2813_v28 = vmul.f32 %v5069_v22, %v2757_v23 }
 0x30a   : > { %v5073_v18 = vpop.eup %5072  ;;  %v2811_v63 = vmul.f32 %v5071_v17, %v2755_v41  ;;  %v5989_v27 = vld [vmem:[#allocation6 + $0x31] sm:$0xff] }
 0x30b   : > { %v5075_v19 = vpop.eup %5074  ;;  %2821 = vst.msk [vmem:[#allocation6 + $0x71] sm:$0xff] %vm473_vm1, %v2813_v28  ;;  %v2814_v54 = vmul.f32 %v5073_v18, %v2758_v47  ;;  %v5981_v37 = vld [vmem:[#allocation6 + $0x11] sm:$0xff]  ;;  %v3445_v28 = vsel %vm899_vm0, %v4147_v14, 0 }
 0x30c   : > { %2819 = vst.msk [vmem:[#allocation6 + $0x51] sm:$0xff] %vm473_vm1, %v2811_v63  ;;  %v2812_v50 = vmul.f32 %v5075_v19, %v2756_v10  ;;  %v2844_v61 = vpack.c.bf16 %v5981_v37, %v5806_v9  ;;  %v4127_v9 = vld [vmem:[%s6220_s8 + $0x8] sm:$0xf]  ;;  %v2824_v59 = vld [vmem:[#allocation6 + $0x10] sm:$0xff]  ;;  %v2827_v0 = vld [vmem:[#allocation6 + $0x40] sm:$0xff] }
 0x30d   : > { %2822 = vst.msk [vmem:[#allocation6 + $0x81] sm:$0xff] %vm473_vm1, %v2814_v54  ;;  %v5987_v51 = vld [vmem:[#allocation6 + $0x21] sm:$0xff]  ;;  %v2831_v33 = vpack.c.bf16 %v2824_v59, %v5841_v57  ;;  %v2826_v60 = vld [vmem:[#allocation6 + $0x30] sm:$0xff]  ;;  %v3037_v25 = vsel %vm899_vm0, %v4127_v9, 0  ;;  %v4152_v63 = vld [vmem:[%s6220_s8 + $0x1c] sm:$0xf] }
 0x30e   : > { %2820 = vst.msk [vmem:[#allocation6 + $0x61] sm:$0xff] %vm473_vm1, %v2812_v50  ;;  %4500 = vmatprep.mubr.msk.bf16.mxu0 %vm473_vm1, %v2844_v61  ;;  %v5995_v53 = vpack.c.bf16 %v5989_v27, %v5987_v51  ;;  %v6005_v21 = vld [vmem:[#allocation6 + $0x41] sm:$0xff]  ;;  %v3011_v3 = vld [vmem:[#allocation6 + $0x12] sm:$0xff]  ;;  %v3121_v34 = vpack.c.bf16 %v2827_v0, %v2826_v60  ;;  %v3222_v5 = vpack.c.bf16 %v5987_v51, %v5981_v37  ;;  %v3547_v37 = vsel %vm899_vm0, %v4152_v63, 0 }
 0x30f   : > { %v2825_v38 = vld [vmem:[#allocation6 + $0x20] sm:$0xff]  ;;  %v3018_v15 = vpack.c.bf16 %v3011_v3, %v5870_v44  ;;  %v3013_v7 = vld [vmem:[#allocation6 + $0x32] sm:$0xff]  ;;  %v3223_v6 = vpack.c.bf16 %v6005_v21, %v5989_v27 }
 0x310   : > { %4501 = vmatmul.mubr.msk.bf16.vlgmr.msra.gmra.mrb[8].mxu0 %vm473_vm1, %v5995_v53  ;;  %v6027_v41 = vpack.c.bf16 %v2826_v60, %v2825_v38  ;;  %v3012_v16 = vld [vmem:[#allocation6 + $0x22] sm:$0xff]  ;;  %v3120_v55 = vpack.c.bf16 %v2825_v38, %v2824_v59  ;;  %v3746_v38 = vld [vmem:[%s5551_s20 + $0x38] sm:$0xff]  ;;  %v4163_v60 = vld [vmem:[%s6223_s11] ss:$0 sm:$0xff] }
 0x311   : > { %4509 = vmatpush3.bf16.msra.mxu0 %v2943_v35  ;;  %v6046_v24 = vpack.c.bf16 %v3013_v7, %v3012_v16  ;;  %v3014_v30 = vld [vmem:[#allocation6 + $0x42] sm:$0xff]  ;;  %v3324_v22 = vpack.c.bf16 %v3012_v16, %v3011_v3 }
 0x312   : > { %4834 = vmatprep.subr.msk.bf16.mxu0 %vm899_vm0, %v4127_v9  ;;  %v6015_v1 = vld [vmem:[#allocation6 + $0x71] sm:$0xff]  ;;  %v3325_v17 = vpack.c.bf16 %v3014_v30, %v3013_v7  ;;  %v4157_v50 = vld [vmem:[%s6220_s8 + $0x20] sm:$0xf]  ;;  %v3740_v9 = vld [vmem:[%s5551_s20 + $0x8] sm:$0xff] }
 0x313   : > { %v6007_v29 = vld [vmem:[#allocation6 + $0x51] sm:$0xff]  ;;  %v3649_v51 = vsel %vm899_vm0, %v4157_v50, 0  ;;  %v3751_v27 = vld [vmem:[%s6222_s10] sm:$0xf] }
 0x314   : > { %v6011_v56 = vpack.c.bf16 %v6007_v29, %v6005_v21  ;;  %v2828_v23 = vld [vmem:[#allocation6 + $0x50] sm:$0xff]  ;;  %v3119_v36 = vld [vmem:[#allocation6 + $0x80] sm:$0xff] }
 0x315   : > { %v6013_v31 = vld [vmem:[#allocation6 + $0x61] sm:$0xff]  ;;  %v6030_v47 = vpack.c.bf16 %v2828_v23, %v2827_v0  ;;  %v2830_v10 = vld [vmem:[#allocation6 + $0x70] sm:$0xff]  ;;  %v3429_v61 = vpack.c.bf16 %v5937_v46, %v3119_v36 }
 0x316   : > { %4504 = vmatprep.mubr.msk.bf16.mxu0 %vm473_vm1, %v6011_v56  ;;  %v6021_v11 = vpack.c.bf16 %v6015_v1, %v6013_v31  ;;  %v2829_v57 = vld [vmem:[#allocation6 + $0x60] sm:$0xff]  ;;  %v3015_v20 = vld [vmem:[#allocation6 + $0x52] sm:$0xff]  ;;  %v3123_v39 = vpack.c.bf16 %v3119_v36, %v2830_v10  ;;  %v3224_v40 = vpack.c.bf16 %v6013_v31, %v6007_v29  ;;  %v3744_v31 = vld [vmem:[%s5551_s20 + $0x28] sm:$0xff] }
 0x317   : > { %v6040_v13 = vpack.c.bf16 %v2830_v10, %v2829_v57  ;;  %v6049_v4 = vpack.c.bf16 %v3015_v20, %v3014_v30  ;;  %v3016_v44 = vld [vmem:[#allocation6 + $0x62] sm:$0xff]  ;;  %v3017_v12 = vld [vmem:[#allocation6 + $0x72] sm:$0xff]  ;;  %v3122_v58 = vpack.c.bf16 %v2829_v57, %v2828_v23 }
 0x318   : > { %4505 = vmatmul.mubr.msk.bf16.gmra.mrb[12].mxu0 %vm473_vm1, %v6021_v11  ;;  %v6059_v32 = vpack.c.bf16 %v3017_v12, %v3016_v44  ;;  %v3221_v42 = vld [vmem:[#allocation6 + $0x81] sm:$0xff]  ;;  %v3326_v18 = vpack.c.bf16 %v3016_v44, %v3015_v20  ;;  %v3741_v29 = vld [vmem:[%s5551_s20 + $0x10] sm:$0xff] }
 0x319   : > { %4510 = vmatprep.mubr.msk.bf16.mxu0 %vm473_vm1, %v2831_v33  ;;  %v3225_v43 = vpack.c.bf16 %v3221_v42, %v6015_v1  ;;  %v3323_v19 = vld [vmem:[#allocation6 + $0x82] sm:$0xff]  ;;  %v3531_v46 = vpack.c.bf16 %v5948_v49, %v3221_v42  ;;  %v3745_v33 = vld [vmem:[%s5551_s20 + $0x30] sm:$0xff] }
 0x31a   : > { %v3327_v54 = vpack.c.bf16 %v3323_v19, %v3017_v12  ;;  %v3739_v35 = vld [vmem:[%s5551_s20] sm:$0xff]  ;;  %v3633_v21 = vpack.c.bf16 %v5957_v48, %v3323_v19  ;;  %v3750_v23 = vpack.c.bf16 %v3746_v38, %v3745_v33 }
 0x31b   : > { %v3747_v49 = vpack.c.bf16 %v3740_v9, %v3739_v35  ;;  %v3743_v59 = vld [vmem:[%s5551_s20 + $0x20] sm:$0xff] }
 0x31c   : > { %v4162_v48 = vld [vmem:[%s6221_s9] ss:$0 sm:$0xff] }
 0x320   : > { %4511 = vmatmul.mubr.msk.bf16.vlgmr.msra.gmra.mrb[8].mxu0 %vm473_vm1, %v6027_v41 }
 0x321   : > { %4519 = vmatpush3.bf16.msra.mxu0 %v3037_v25  ;;  %4514 = vmatprep.mubr.msk.bf16.mxu0 %vm473_vm1, %v6030_v47 }
 0x322   : > { %4835 = vmatprep.subr.msk.bf16.mxu0 %vm899_vm0, %v4132_v45 }
 0x328   : > { %4515 = vmatmul.mubr.msk.bf16.gmra.mrb[12].mxu0 %vm473_vm1, %v6040_v13 }
 0x329   : > { %4520 = vmatprep.mubr.msk.bf16.mxu0 %vm473_vm1, %v3018_v15 }
 0x330   : > { %4521 = vmatmul.mubr.msk.bf16.vlgmr.msra.gmra.mrb[8].mxu0 %vm473_vm1, %v6046_v24 }
 0x331   : > { %4529 = vmatpush3.bf16.msra.mxu0 %v3139_v26  ;;  %4524 = vmatprep.mubr.msk.bf16.mxu0 %vm473_vm1, %v6049_v4 }
 0x332   : > { %4836 = vmatprep.subr.msk.bf16.mxu0 %vm899_vm0, %v4137_v52 }
 0x338   : > { %4525 = vmatmul.mubr.msk.bf16.gmra.mrb[12].mxu0 %vm473_vm1, %v6059_v32 }
 0x339   : > { %4530 = vmatprep.mubr.msk.bf16.mxu0 %vm473_vm1, %v3120_v55 }
 0x340   : > { %4531 = vmatmul.mubr.msk.bf16.vlgmr.msra.gmra.mrb[8].mxu0 %vm473_vm1, %v3121_v34 }
 0x341   : > { %4539 = vmatpush3.bf16.msra.mxu0 %v3241_v8  ;;  %4534 = vmatprep.mubr.msk.bf16.mxu0 %vm473_vm1, %v3122_v58 }
 0x342   : > { %4837 = vmatprep.subr.msk.bf16.mxu0 %vm899_vm0, %v4142_v62 }
 0x348   : > { %4535 = vmatmul.mubr.msk.bf16.gmra.mrb[12].mxu0 %vm473_vm1, %v3123_v39 }
 0x349   : > { %4540 = vmatprep.mubr.msk.bf16.mxu0 %vm473_vm1, %v3222_v5 }
 0x350   : > { %4541 = vmatmul.mubr.msk.bf16.vlgmr.msra.gmra.mrb[8].mxu0 %vm473_vm1, %v3223_v6 }
 0x351   : > { %4549 = vmatpush3.bf16.msra.mxu0 %v3343_v2  ;;  %4544 = vmatprep.mubr.msk.bf16.mxu0 %vm473_vm1, %v3224_v40 }
 0x352   : > { %4838 = vmatprep.subr.msk.bf16.mxu0 %vm899_vm0, %v4147_v14 }
 0x358   : > { %4545 = vmatmul.mubr.msk.bf16.gmra.mrb[12].mxu0 %vm473_vm1, %v3225_v43 }
 0x359   : > { %4550 = vmatprep.mubr.msk.bf16.mxu0 %vm473_vm1, %v3324_v22 }
 0x360   : > { %4551 = vmatmul.mubr.msk.bf16.vlgmr.msra.gmra.mrb[8].mxu0 %vm473_vm1, %v3325_v17 }
 0x361   : > { %4559 = vmatpush3.bf16.msra.mxu0 %v3445_v28  ;;  %4554 = vmatprep.mubr.msk.bf16.mxu0 %vm473_vm1, %v3326_v18 }
 0x362   : > { %4839 = vmatprep.subr.msk.bf16.mxu0 %vm899_vm0, %v4152_v63 }
 0x368   : > { %4555 = vmatmul.mubr.msk.bf16.gmra.mrb[12].mxu0 %vm473_vm1, %v3327_v54 }
 0x369   : > { %4560 = vmatprep.mubr.msk.bf16.mxu0 %vm473_vm1, %v6027_v41  ;;  %v4612_v41 = vadd.f32 %v4163_v60, %v4162_v48 }
 0x370   : > { %4561 = vmatmul.mubr.msk.bf16.vlgmr.msra.gmra.mrb[8].mxu0 %vm473_vm1, %v6030_v47 }
 0x371   : > { %4569 = vmatpush3.bf16.msra.mxu0 %v3547_v37  ;;  %4564 = vmatprep.mubr.msk.bf16.mxu0 %vm473_vm1, %v6040_v13 }
 0x372   : > { %4840 = vmatprep.subr.msk.bf16.mxu0 %vm899_vm0, %v4157_v50 }
 0x378   : > { %4565 = vmatmul.mubr.msk.bf16.gmra.mrb[12].mxu0 %vm473_vm1, %v3429_v61 }
 0x379   : > { %4570 = vmatprep.mubr.msk.bf16.mxu0 %vm473_vm1, %v5995_v53  ;;  %v3772_v53 = vsel %vm899_vm0, %v3751_v27, 0 }
 0x380   : > { %4571 = vmatmul.mubr.msk.bf16.vlgmr.msra.gmra.mrb[8].mxu0 %vm473_vm1, %v6011_v56  ;;  %v3742_v56 = vld [vmem:[%s5551_s20 + $0x18] sm:$0xff]  ;;  %s451_s20 = scalar_lea.vmem [#allocation7], %s3971_s18  ;;  %s5141_s18 = smov [#allocation7]  }
 0x381   : > { %4579 = vmatpush3.bf16.msra.mxu0 %v3649_v51  ;;  %4574 = vmatprep.mubr.msk.bf16.mxu0 %vm473_vm1, %v6021_v11  ;;  %v3748_v1 = vpack.c.bf16 %v3742_v56, %v3741_v29  ;;  %v3749_v11 = vpack.c.bf16 %v3744_v31, %v3743_v59  ;;  %s3869_s26 = sshll.u32 %s451_s20, 4  ;;  %s5080_s28 = sshll.u32 %s5141_s18, 4  ;;  %s6164_s26 = int_to_ptr.vmem [resolvable:$true] %s3869_s26  ;;  %s5081_s28 = int_to_ptr.vmem [resolvable:$false] %s5080_s28 }
 0x382   : > { %4841 = vmatprep.subr.msk.bf16.mxu0 %vm899_vm0, %v3751_v27  ;;  %s5076_s15 = scalar_lea.vmem %s6164_s26, 1024  ;;  %s5082_s16 = scalar_lea.vmem %s5081_s28, 2048 }
 0x383   : > { %p5077_p11 = scmp.ne.s32.totalorder %s6164_s26, %s5076_s15  ;;  %p5083_p0 = scmp.lt.s32.totalorder %s6164_s26, %s5081_s28 }
 0x384   : > { %p5084_p1 = scmp.lt.s32.totalorder %s5082_s16, %s5076_s15 }
 0x385   : > { %p5078_p12 = pnand %p5077_p11, %p5247_p5 }
 0x386   : > { %p5085_p2 = por %p5084_p1, %p5083_p0 }
 0x387   : > { %p5079_p13 = pneg %p5078_p12 }
 0x388   : > { %4575 = vmatmul.mubr.msk.bf16.gmra.mrb[12].mxu0 %vm473_vm1, %v3531_v46 }
 0x389   : > { %4580 = vmatprep.mubr.msk.bf16.mxu0 %vm473_vm1, %v6046_v24  ;;  %p5086_p3 = pnand %p5085_p2, %p5079_p13 }
 0x390   : > { %4581 = vmatmul.mubr.msk.bf16.vlgmr.msra.gmra.mrb[8].mxu0 %vm473_vm1, %v6049_v4 }
 0x391   : > { %4589 = vmatpush3.bf16.msra.mxu0 %v3772_v53  ;;  %4584 = vmatprep.mubr.msk.bf16.mxu0 %vm473_vm1, %v6059_v32 }
 0x398   : > { %4585 = vmatmul.mubr.msk.bf16.gmra.mrb[12].mxu0 %vm473_vm1, %v3633_v21 }
 0x399   : > { %4590 = vmatprep.mubr.msk.bf16.mxu0 %vm473_vm1, %v3747_v49 }
 0x3a0   : > { %4591 = vmatmul.mubr.msk.bf16.vlgmr.msra.gmra.mrb[8].mxu0 %vm473_vm1, %v3748_v1 }
 0x3a1   : > { %4594 = vmatprep.mubr.msk.bf16.mxu0 %vm473_vm1, %v3749_v11 }
 0x3a8   : > { %4595 = vmatmul.mubr.msk.bf16.gmra.mrb[12].mxu0 %vm473_vm1, %v3750_v23 }
 0x473   : > { %v4592_v25 = vpop.f32.mrb[8].mxu0 }
 0x474   : > { %v4606_v0 = vadd.f32 %v4592_v25, %v4162_v48  ;;  %v3808_v47 = vpop.f32.mrb[9].mxu0 }
 0x475   : > { %v4608_v45 = vadd.f32 %v4162_v48, %v3808_v47  ;;  %v4593_v57 = vpop.f32.mrb[10].mxu0 }
 0x476   : > { %v4607_v3 = vadd.f32 %v4606_v0, %v4163_v60  ;;  %v4611_v10 = vadd.f32 %v4612_v41, %v4593_v57  ;;  %v3811_v13 = vpop.f32.mrb[11].mxu0 }
 0x477   : > { %v4609_v15 = vadd.f32 %v4608_v45, %v4163_v60  ;;  %v4613_v16 = vadd.f32 %v4612_v41, %v3811_v13 }
 0x478   : > { %3849 = vst.msk [vmem:[%s451_s20 + $0x10] sm:$0xff] %vm473_vm1, %v4607_v3  ;;  %3850 = vst.msk [vmem:[%s451_s20 + $0x18] sm:$0xff] %vm473_vm1, %v4611_v10 }
 0x479   : > { %3847 = vst.msk [vmem:[%s451_s20] sm:$0xff] %vm473_vm1, %v4609_v15  ;;  %3848 = vst.msk [vmem:[%s451_s20 + $0x8] sm:$0xff] %vm473_vm1, %v4613_v16 }
 0x47b   : > { %v4596_v20 = vpop.f32.mrb[12].mxu0 }
 0x47c   : > { %v4615_v7 = vadd.f32 %v4612_v41, %v4596_v20  ;;  %v3824_v24 = vpop.f32.mrb[13].mxu0 }
 0x47d   : > { %v4617_v26 = vadd.f32 %v4612_v41, %v3824_v24  ;;  %v4597_v30 = vpop.f32.mrb[14].mxu0 }
 0x47e   : > { %3853 = vst.msk [vmem:[%s451_s20 + $0x30] sm:$0xff] %vm473_vm1, %v4615_v7  ;;  %v4619_v4 = vadd.f32 %v4612_v41, %v4597_v30  ;;  %v3827_v52 = vpop.f32.mrb[15].mxu0 }
 0x47f   : > { %3851 = vst.msk [vmem:[%s451_s20 + $0x20] sm:$0xff] %vm473_vm1, %v4617_v26  ;;  %v4621_v44 = vadd.f32 %v4612_v41, %v3827_v52 }
 0x480   : > { %3854 = vst.msk [vmem:[%s451_s20 + $0x38] sm:$0xff] %vm473_vm1, %v4619_v4 }
 0x481   : > { %3852 = vst.msk [vmem:[%s451_s20 + $0x28] sm:$0xff] %vm473_vm1, %v4621_v44 }
 0x482   : > { %5089 = shalt.err (!%p5086_p3)
}
 0x483   : > { %s5090_s29 = scalar_lea.hbm %s6162_s19, 1024  ;;  %s5094_s18 = scalar_lea.hbm %s6224_s12, 2048 }
 0x484   : > { %p5091_p4 = scmp.ne.s32.totalorder %s6162_s19, %s5090_s29  ;;  %p5095_p9 = scmp.lt.u32.totalorder %s6162_s19, %s6224_s12 }
 0x485   : > { %p5096_p10 = scmp.lt.u32.totalorder %s5094_s18, %s5090_s29  ;;  %p5098_p12 = scmp.lt.u32.totalorder %s5090_s29, %s6162_s19 }
 0x486   : > { %p5092_p7 = pnand %p5091_p4, %p5247_p5 }
 0x487   : > { %p5097_p11 = por %p5096_p10, %p5095_p9 }
 0x488   : > { %p5093_p8 = pneg %p5092_p7 }
 0x489   : > { %p5099_p13 = por %p5098_p12, %p5097_p11 }
 0x48b   : > { %p5100_p0 = pnand %p5099_p13, %p5093_p8 }
 0x48d   : > { %5103 = shalt.err (!%p5100_p0)
}
 0x48e   : > { %s5142_s15 = smov 128   ;;  %s5143_s16 = smov 8  }
 0x48f   : > { %4842 = dma.vmem_to_hbm [thread:$0]  (%p5247_p5), %s6164_s26, 1024, %s6162_s19, %s6171_s25, %s5142_s15, %s5142_s15, %s5143_s16  }
 0x490 PF: > { %p4848_p1 = scmp.ge.s32.totalorder %s5138_s24, 2  ;;  %s3884_s0 = sand.u32 1, %s5126_s21  }
 0x491   : > { %s3885_s29 = scalar_lea.sflag [#allocation8], %s3884_s0 }
 0x492   : > { %p4845_p2 = pnand %p4848_p1, %p5251_p6 }
 0x494   : > { %5121 = dma.done.wait (!%p4845_p2), %s3885_s29, 1024  }
 0x495   : > { %5123 = vsyncadd (!%p4845_p2), %s3885_s29, 4294966272  ;;  %p22_p3 = scmp.ge.s32.totalorder %s5234_s27, 4   ;;  %s6229_s21 = smov %s5130_s22 }
 0x496   : > { %s6230_s22 = smov %s5134_s23  ;;  %s6231_s23 = smov %s5245_s30 }
 0x497   : > { %s6232_s24 = smov %s5234_s27  ;;  %24 = sbr.rel (!%p22_p3) target bundleno = 5 (0x5), region = 142 }
 0x49e   :  { %3890 = vsyncpa [#allocation8], 1 }
 0x49f   :  { %3892 = vsyncpa [#allocation8 + $0x1], 1 }

</bundles_post_ra>
